<compile_context>
chip_gen: v7x
topology: tpu7x:2x2x1
jax: 0.10.0
libtpu: 0.0.40
codegen_flags: <defaults>
</compile_context>

<pallas_src>
import jax
import jax.numpy as jnp
from jax.experimental import pallas as pl
from jax.experimental.pallas import tpu as pltpu


def _leaky_relu(x, negative_slope=0.01):
    # torch.nn.functional.leaky_relu default negative_slope = 0.01
    return jnp.where(x > 0, x, negative_slope * x)


def _round_down(x, m):
    return (x // m) * m


def _vmem_capacity_bytes():
    """Per-core VMEM capacity; conservative (v7x) fallback if unavailable."""
    try:
        info = pltpu.get_tpu_info()
        cap = getattr(info, "vmem_capacity_bytes", None)
        if cap:
            return int(cap)
    except Exception:
        pass
    return 64 * 2 ** 20


# ---------------------------------------------------------------------------
# Kernel: everything is a plain 2-D MXU dot; all VPU work (bias add,
# leaky_relu) stays f32 (v5e has no bf16 VPU).
# ---------------------------------------------------------------------------
def seq2func_kernel(cell_ref, smiles_ref,
                    wc_ref, bc_ref, ws_ref, bs_ref,
                    w1c_ref, w1s_ref, b1_ref,
                    w2_ref, b2_ref,
                    out_ref):
    f32 = jnp.float32
    wdt = w1c_ref.dtype  # weight dtype (bf16 by default)

    # ----- encoders: mean-pool + linear fused into one dot each -----
    # (1/L folded into the L-times row-stacked weights, built wrapper-side)
    cell_out = _leaky_relu(
        jnp.dot(cell_ref[...], wc_ref[...], preferred_element_type=f32)
        + bc_ref[...])                                  # (TB, Ec)  f32
    smiles_out = _leaky_relu(
        jnp.dot(smiles_ref[...], ws_ref[...], preferred_element_type=f32)
        + bs_ref[...])                                  # (TB, Es)  f32

    # ----- fc1 (concat removed: split weight, two accumulating dots) -----
    o1 = _leaky_relu(
        jnp.dot(cell_out.astype(wdt), w1c_ref[...], preferred_element_type=f32)
        + jnp.dot(smiles_out.astype(wdt), w1s_ref[...], preferred_element_type=f32)
        + b1_ref[...])                                  # (TB, HID) f32

    # dropout: eval()/inference semantics -> identity.

    # ----- fc2 -> leaky_relu (lane-dense padded output, bf16 writeback) -----
    final = _leaky_relu(
        jnp.dot(o1.astype(wdt), w2_ref[...], preferred_element_type=f32)
        + b2_ref[...])                                  # (TB, OUT_PAD) f32

    out_ref[...] = final.astype(out_ref.dtype)


# ---------------------------------------------------------------------------
# One-time weight preparation (hoisted out of the per-batch forward).
# ---------------------------------------------------------------------------
def prepare_weights(params, Lc, Dc, Ls, Ds, *, weight_dtype=jnp.bfloat16):
    Ec = params["wc"].shape[1]
    Es = params["ws"].shape[1]
    HID = params["w1"].shape[1]
    OUT = params["w2"].shape[1]
    OUT_PAD = pl.cdiv(OUT, 128) * 128        # lane-dense output width

    # Encoder weights: row-stack L copies with the 1/L mean fold, so
    # (B, L*D) @ (L*D, E) == mean-pool-then-linear.
    # Note: folding 1/L into bf16 weights is a tiny systematic rounding
    # difference vs a pure-f32 torch forward (matches the reference policy).
    wc_rep = jnp.tile(params["wc"] / Lc, (Lc, 1)).astype(weight_dtype)   # (Lc*Dc, Ec)
    ws_rep = jnp.tile(params["ws"] / Ls, (Ls, 1)).astype(weight_dtype)   # (Ls*Ds, Es)

    w1c = params["w1"][:Ec].astype(weight_dtype)          # (Ec, HID) cell half
    w1s = params["w1"][Ec:].astype(weight_dtype)          # (Es, HID) smiles half
    w2p = jnp.zeros((HID, OUT_PAD), jnp.float32).at[:, :OUT].set(
        params["w2"]).astype(weight_dtype)                # (HID, OUT_PAD)
    b2p = jnp.zeros((1, OUT_PAD), jnp.float32).at[:, :OUT].set(params["b2"])

    return dict(
        wc_rep=wc_rep, bc=params["bc"].astype(jnp.float32),
        ws_rep=ws_rep, bs=params["bs"].astype(jnp.float32),
        w1c=w1c, w1s=w1s, b1=params["b1"].astype(jnp.float32),
        w2p=w2p, b2p=b2p, out_dim=int(OUT))


_WEIGHT_NAMES = ("wc_rep", "bc", "ws_rep", "bs", "w1c", "w1s", "b1", "w2p", "b2p")


# ---------------------------------------------------------------------------
# Forward wrapper: one pallas_call, batch-tiled grid, resident weights.
# ---------------------------------------------------------------------------
def seq2func_forward(cell_src, smiles_src, prepped, *, block_b=1024):
    B, Lc, Dc = cell_src.shape
    _, Ls, Ds = smiles_src.shape
    wdt = prepped["w1c"].dtype
    Ec = prepped["w1c"].shape[0]
    Es = prepped["w1s"].shape[0]
    HID = prepped["w1c"].shape[1]
    OUT_PAD = prepped["w2p"].shape[1]
    OUT = prepped["out_dim"]
    item = jnp.dtype(wdt).itemsize

    # Flatten (free, row-major contiguous) and stream in the weight dtype
    # (bf16): halves the dominant HBM bytes.  Ideally the producer emits bf16
    # directly so this cast disappears.
    cell_flat = cell_src.reshape(B, Lc * Dc)
    smiles_flat = smiles_src.reshape(B, Ls * Ds)
    if cell_flat.dtype != wdt:
        cell_flat = cell_flat.astype(wdt)
    if smiles_flat.dtype != wdt:
        smiles_flat = smiles_flat.astype(wdt)
    # NOTE: if the data producer could emit one concatenated (B, Lc*Dc+Ls*Ds)
    # slab, a single stream + block-diagonal encoder weight would halve the
    # DMA streams per step; a wrapper-side concat would negate that, so skip.

    # --- batch tile: sublane-aligned, >= 2 grid steps, sized to VMEM ---
    sub = 16 if item == 2 else 8            # sublane multiple for packed dtypes
    if B <= sub:
        TB = B                              # single full-batch tile
    else:
        # >= 2 grid steps (>= 4 when the batch allows): lets the "parallel"
        # batch axis shard across v7x's two TensorCores and gives the
        # double-buffered DMA pipeline something to overlap.
        target_steps = 4 if B >= 4 * sub else 2
        TB = max(sub, _round_down(pl.cdiv(B, target_steps), sub))
        TB = min(TB, max(block_b, sub))

    vmem_cap = _vmem_capacity_bytes()
    weight_bytes = sum(int(prepped[n].size) * prepped[n].dtype.itemsize
                       for n in _WEIGHT_NAMES)
    in_row_bytes = (Lc * Dc + Ls * Ds) * item
    out_row_bytes = OUT_PAD * item
    inter_row_bytes = (Ec + Es + HID + OUT_PAD) * 4     # rough f32 intermediates

    def vmem_usage(tb):
        # double-buffered streamed tiles + resident weights + intermediates
        return (2 * tb * in_row_bytes + 2 * tb * out_row_bytes
                + weight_bytes + tb * inter_row_bytes)

    # Shrink TB to the per-generation VMEM budget (instead of relying on a
    # clamped vmem_limit with an oversized tile).
    budget = int(0.75 * vmem_cap)
    while TB > sub and vmem_usage(TB) > budget:
        new_tb = max(sub, _round_down(TB // 2, sub))
        if new_tb == TB:
            break
        TB = new_tb

    grid = (pl.cdiv(B, TB),)
    # When B % TB != 0 the tail tile reads padded rows; batch rows are
    # independent and the padded output rows are never observed, so this is
    # benign -- do NOT add any cross-row reduction to the kernel.

    vmem_limit = int(min(max(2 * vmem_usage(TB), 16 * 2 ** 20),
                         100 * 2 ** 20,                 # v5e/v6e: 128 MiB physical
                         int(0.85 * vmem_cap)))         # v7x: 64 MiB physical

    def stream_spec(width):
        return pl.BlockSpec((TB, width), lambda i: (i, 0))

    def run(single_buffer_weights):
        if single_buffer_weights:
            # Weights never change block index -> the second pipeline buffer
            # is dead VMEM; request a single buffer.
            def const(shape):
                return pl.BlockSpec(shape, lambda i: (0, 0),
                                    pipeline_mode=pl.Buffered(1))
        else:
            def const(shape):
                return pl.BlockSpec(shape, lambda i: (0, 0))

        return pl.pallas_call(
            seq2func_kernel,
            out_shape=jax.ShapeDtypeStruct((B, OUT_PAD), wdt),   # bf16 writeback
            grid=grid,
            in_specs=[
                stream_spec(Lc * Dc),                            # cell (B, L*D)
                stream_spec(Ls * Ds),                            # smiles (B, L*D)
                const((Lc * Dc, Ec)), const((1, Ec)),            # wc_rep, bc
                const((Ls * Ds, Es)), const((1, Es)),            # ws_rep, bs
                const((Ec, HID)), const((Es, HID)), const((1, HID)),  # fc1
                const((HID, OUT_PAD)), const((1, OUT_PAD)),      # fc2 (padded)
            ],
            out_specs=pl.BlockSpec((TB, OUT_PAD), lambda i: (i, 0)),
            compiler_params=pltpu.CompilerParams(
                dimension_semantics=("parallel",),   # batch tiles independent
                vmem_limit_bytes=vmem_limit),
        )(cell_flat, smiles_flat,
          prepped["wc_rep"], prepped["bc"], prepped["ws_rep"], prepped["bs"],
          prepped["w1c"], prepped["w1s"], prepped["b1"],
          prepped["w2p"], prepped["b2p"])

    try:
        out_pad = run(single_buffer_weights=True)
    except Exception:
        # pipeline_mode=pl.Buffered(1) unsupported in this jax build; the
        # default double-buffered weight path is correct, just uses more VMEM.
        out_pad = run(single_buffer_weights=False)

    return out_pad[:, :OUT].astype(jnp.float32)


# ---------------------------------------------------------------------------
# Synthetic init + pure-JAX reference (same precision policy as the kernel).
# ---------------------------------------------------------------------------
def init_params(key, cell_feat, smiles_feat, cell_out, smiles_out,
                hid_dim, out_dim):
    """Deterministic synthetic parameter init (torch.nn.Linear-like bounds)."""
    ks = jax.random.split(key, 8)

    def lin(kw, kb, fan_in, fan_out):
        bound = 1.0 / jnp.sqrt(fan_in)
        w = jax.random.uniform(kw, (fan_in, fan_out), jnp.float32, -bound, bound)
        b = jax.random.uniform(kb, (1, fan_out), jnp.float32, -bound, bound)
        return w, b

    wc, bc = lin(ks[0], ks[1], cell_feat, cell_out)
    ws, bs = lin(ks[2], ks[3], smiles_feat, smiles_out)
    w1, b1 = lin(ks[4], ks[5], cell_out + smiles_out, hid_dim)
    w2, b2 = lin(ks[6], ks[7], hid_dim, out_dim)
    return dict(wc=wc, bc=bc, ws=ws, bs=bs, w1=w1, b1=b1, w2=w2, b2=b2)


def reference_forward(cell_src, smiles_src, prepped):
    """Pure-JAX reference using the same prepared weights / precision policy."""
    f32 = jnp.float32
    wdt = prepped["w1c"].dtype
    B = cell_src.shape[0]
    c = cell_src.reshape(B, -1).astype(wdt)
    s = smiles_src.reshape(B, -1).astype(wdt)
    cell_out = _leaky_relu(
        jnp.dot(c, prepped["wc_rep"], preferred_element_type=f32) + prepped["bc"])
    smiles_out = _leaky_relu(
        jnp.dot(s, prepped["ws_rep"], preferred_element_type=f32) + prepped["bs"])
    o1 = _leaky_relu(
        jnp.dot(cell_out.astype(wdt), prepped["w1c"], preferred_element_type=f32)
        + jnp.dot(smiles_out.astype(wdt), prepped["w1s"], preferred_element_type=f32)
        + prepped["b1"])
    final = _leaky_relu(
        jnp.dot(o1.astype(wdt), prepped["w2p"], preferred_element_type=f32)
        + prepped["b2p"])
    return final[:, :prepped["out_dim"]]


if __name__ == "__main__":
    # Small shapes consistent with the module's forward:
    B = 32              # batch
    Lc, Dc = 16, 32     # cell sequence length / feature dim
    Ls, Ds = 8, 32      # smiles sequence length / feature dim
    Ec, Es = 64, 64     # cell_encoder.out_dim, smiles_encoder.out_dim
    HID, OUT = 128, 8   # hid_dim, out_dim

    key = jax.random.PRNGKey(0)
    k_cell, k_smiles, k_params = jax.random.split(key, 3)

    cell_src = jax.random.normal(k_cell, (B, Lc, Dc), jnp.float32)
    smiles_src = jax.random.normal(k_smiles, (B, Ls, Ds), jnp.float32)
    params = init_params(k_params, Dc, Ds, Ec, Es, HID, OUT)

    # Weight prep runs ONCE per parameter set (hoisted out of the hot path).
    prepped = prepare_weights(params, Lc, Dc, Ls, Ds, weight_dtype=jnp.bfloat16)

    # At B=32 the tile logic picks TB=16 -> a 2-step grid, so the pipelined /
    # megacore-shardable path is actually exercised even at demo size.
    out = seq2func_forward(cell_src, smiles_src, prepped)
    out = jax.block_until_ready(out)

    ref = reference_forward(cell_src, smiles_src, prepped)
    assert out.shape == (B, OUT)
    # bf16 output writeback + MXU-vs-XLA summation order => ~1e-2 tolerance.
    assert jnp.allclose(out, ref, atol=1e-2, rtol=1e-2), (
        "max abs diff = %g" % float(jnp.max(jnp.abs(out - ref))))

    print("KERNEL_OK")
</pallas_src>

<mosaic_0001>
module attributes {stable_mosaic.version = 11 : i64} {
  func.func @seq2func_kernel(%arg0: i32, %arg1: memref<16x512xbf16, #tpu.memory_space<vmem>>, %arg2: memref<16x256xbf16, #tpu.memory_space<vmem>>, %arg3: memref<512x64xbf16, #tpu.memory_space<vmem>>, %arg4: memref<1x64xf32, #tpu.memory_space<vmem>>, %arg5: memref<256x64xbf16, #tpu.memory_space<vmem>>, %arg6: memref<1x64xf32, #tpu.memory_space<vmem>>, %arg7: memref<64x128xbf16, #tpu.memory_space<vmem>>, %arg8: memref<64x128xbf16, #tpu.memory_space<vmem>>, %arg9: memref<1x128xf32, #tpu.memory_space<vmem>>, %arg10: memref<128x128xbf16, #tpu.memory_space<vmem>>, %arg11: memref<1x128xf32, #tpu.memory_space<vmem>>, %arg12: memref<16x128xbf16, #tpu.memory_space<vmem>>) attributes {dimension_semantics = [#tpu.dimension_semantics<parallel>], iteration_bounds = array<i64: 2>, scalar_prefetch = 0 : i64, scratch_operands = 0 : i64, tpu.core_type = #tpu.core_type<tc>, window_params = [{transform_indices = @transform_0, window_bounds = array<i64: 16, 512>}, {transform_indices = @transform_1, window_bounds = array<i64: 16, 256>}, {pipeline_mode = #tpu.pipeline_mode<synchronous>, transform_indices = @transform_2, window_bounds = array<i64: 512, 64>}, {pipeline_mode = #tpu.pipeline_mode<synchronous>, transform_indices = @transform_3, window_bounds = array<i64: 1, 64>}, {pipeline_mode = #tpu.pipeline_mode<synchronous>, transform_indices = @transform_4, window_bounds = array<i64: 256, 64>}, {pipeline_mode = #tpu.pipeline_mode<synchronous>, transform_indices = @transform_5, window_bounds = array<i64: 1, 64>}, {pipeline_mode = #tpu.pipeline_mode<synchronous>, transform_indices = @transform_6, window_bounds = array<i64: 64, 128>}, {pipeline_mode = #tpu.pipeline_mode<synchronous>, transform_indices = @transform_7, window_bounds = array<i64: 64, 128>}, {pipeline_mode = #tpu.pipeline_mode<synchronous>, transform_indices = @transform_8, window_bounds = array<i64: 1, 128>}, {pipeline_mode = #tpu.pipeline_mode<synchronous>, transform_indices = @transform_9, window_bounds = array<i64: 128, 128>}, {pipeline_mode = #tpu.pipeline_mode<synchronous>, transform_indices = @transform_10, window_bounds = array<i64: 1, 128>}, {transform_indices = @transform_11, window_bounds = array<i64: 16, 128>}]} {
    %c0 = arith.constant 0 : index
    %c0_0 = arith.constant 0 : index
    %0 = vector.load %arg1[%c0, %c0_0] : memref<16x512xbf16, #tpu.memory_space<vmem>>, vector<16x512xbf16>
    %c0_1 = arith.constant 0 : index
    %c0_2 = arith.constant 0 : index
    %1 = vector.load %arg3[%c0_1, %c0_2] : memref<512x64xbf16, #tpu.memory_space<vmem>>, vector<512x64xbf16>
    %cst = arith.constant dense<0.000000e+00> : vector<16x64xf32>
    %2 = tpu.matmul %0, %1, %cst {dimension_numbers = #tpu.dot_dimension_numbers<[1], [0], [0], [1], [0, 0, 1, 1], [], []>} : vector<16x512xbf16>, vector<512x64xbf16>, vector<16x64xf32> -> vector<16x64xf32>
    %c0_3 = arith.constant 0 : index
    %c0_4 = arith.constant 0 : index
    %3 = vector.load %arg4[%c0_3, %c0_4] : memref<1x64xf32, #tpu.memory_space<vmem>>, vector<1x64xf32>
    %4 = vector.broadcast %3 : vector<1x64xf32> to vector<16x64xf32>
    %5 = arith.addf %2, %4 : vector<16x64xf32>
    %cst_5 = arith.constant 0.000000e+00 : f32
    %6 = vector.broadcast %cst_5 : f32 to vector<16x64xf32>
    %7 = arith.cmpf ogt, %5, %6 : vector<16x64xf32>
    %cst_6 = arith.constant 0.00999999977 : f32
    %8 = vector.broadcast %cst_6 : f32 to vector<16x64xf32>
    %9 = arith.mulf %8, %5 : vector<16x64xf32>
    %10 = arith.select %7, %5, %9 : vector<16x64xi1>, vector<16x64xf32>
    %c0_7 = arith.constant 0 : index
    %c0_8 = arith.constant 0 : index
    %11 = vector.load %arg2[%c0_7, %c0_8] : memref<16x256xbf16, #tpu.memory_space<vmem>>, vector<16x256xbf16>
    %c0_9 = arith.constant 0 : index
    %c0_10 = arith.constant 0 : index
    %12 = vector.load %arg5[%c0_9, %c0_10] : memref<256x64xbf16, #tpu.memory_space<vmem>>, vector<256x64xbf16>
    %cst_11 = arith.constant dense<0.000000e+00> : vector<16x64xf32>
    %13 = tpu.matmul %11, %12, %cst_11 {dimension_numbers = #tpu.dot_dimension_numbers<[1], [0], [0], [1], [0, 0, 1, 1], [], []>} : vector<16x256xbf16>, vector<256x64xbf16>, vector<16x64xf32> -> vector<16x64xf32>
    %c0_12 = arith.constant 0 : index
    %c0_13 = arith.constant 0 : index
    %14 = vector.load %arg6[%c0_12, %c0_13] : memref<1x64xf32, #tpu.memory_space<vmem>>, vector<1x64xf32>
    %15 = vector.broadcast %14 : vector<1x64xf32> to vector<16x64xf32>
    %16 = arith.addf %13, %15 : vector<16x64xf32>
    %cst_14 = arith.constant 0.000000e+00 : f32
    %17 = vector.broadcast %cst_14 : f32 to vector<16x64xf32>
    %18 = arith.cmpf ogt, %16, %17 : vector<16x64xf32>
    %cst_15 = arith.constant 0.00999999977 : f32
    %19 = vector.broadcast %cst_15 : f32 to vector<16x64xf32>
    %20 = arith.mulf %19, %16 : vector<16x64xf32>
    %21 = arith.select %18, %16, %20 : vector<16x64xi1>, vector<16x64xf32>
    %22 = arith.truncf %10 : vector<16x64xf32> to vector<16x64xbf16>
    %c0_16 = arith.constant 0 : index
    %c0_17 = arith.constant 0 : index
    %23 = vector.load %arg7[%c0_16, %c0_17] : memref<64x128xbf16, #tpu.memory_space<vmem>>, vector<64x128xbf16>
    %cst_18 = arith.constant dense<0.000000e+00> : vector<16x128xf32>
    %24 = tpu.matmul %22, %23, %cst_18 {dimension_numbers = #tpu.dot_dimension_numbers<[1], [0], [0], [1], [0, 0, 1, 1], [], []>} : vector<16x64xbf16>, vector<64x128xbf16>, vector<16x128xf32> -> vector<16x128xf32>
    %25 = arith.truncf %21 : vector<16x64xf32> to vector<16x64xbf16>
    %c0_19 = arith.constant 0 : index
    %c0_20 = arith.constant 0 : index
    %26 = vector.load %arg8[%c0_19, %c0_20] : memref<64x128xbf16, #tpu.memory_space<vmem>>, vector<64x128xbf16>
    %cst_21 = arith.constant dense<0.000000e+00> : vector<16x128xf32>
    %27 = tpu.matmul %25, %26, %cst_21 {dimension_numbers = #tpu.dot_dimension_numbers<[1], [0], [0], [1], [0, 0, 1, 1], [], []>} : vector<16x64xbf16>, vector<64x128xbf16>, vector<16x128xf32> -> vector<16x128xf32>
    %28 = arith.addf %24, %27 : vector<16x128xf32>
    %c0_22 = arith.constant 0 : index
    %c0_23 = arith.constant 0 : index
    %29 = vector.load %arg9[%c0_22, %c0_23] : memref<1x128xf32, #tpu.memory_space<vmem>>, vector<1x128xf32>
    %30 = vector.broadcast %29 : vector<1x128xf32> to vector<16x128xf32>
    %31 = arith.addf %28, %30 : vector<16x128xf32>
    %cst_24 = arith.constant 0.000000e+00 : f32
    %32 = vector.broadcast %cst_24 : f32 to vector<16x128xf32>
    %33 = arith.cmpf ogt, %31, %32 : vector<16x128xf32>
    %cst_25 = arith.constant 0.00999999977 : f32
    %34 = vector.broadcast %cst_25 : f32 to vector<16x128xf32>
    %35 = arith.mulf %34, %31 : vector<16x128xf32>
    %36 = arith.select %33, %31, %35 : vector<16x128xi1>, vector<16x128xf32>
    %37 = arith.truncf %36 : vector<16x128xf32> to vector<16x128xbf16>
    %c0_26 = arith.constant 0 : index
    %c0_27 = arith.constant 0 : index
    %38 = vector.load %arg10[%c0_26, %c0_27] : memref<128x128xbf16, #tpu.memory_space<vmem>>, vector<128x128xbf16>
    %cst_28 = arith.constant dense<0.000000e+00> : vector<16x128xf32>
    %39 = tpu.matmul %37, %38, %cst_28 {dimension_numbers = #tpu.dot_dimension_numbers<[1], [0], [0], [1], [0, 0, 1, 1], [], []>} : vector<16x128xbf16>, vector<128x128xbf16>, vector<16x128xf32> -> vector<16x128xf32>
    %c0_29 = arith.constant 0 : index
    %c0_30 = arith.constant 0 : index
    %40 = vector.load %arg11[%c0_29, %c0_30] : memref<1x128xf32, #tpu.memory_space<vmem>>, vector<1x128xf32>
    %41 = vector.broadcast %40 : vector<1x128xf32> to vector<16x128xf32>
    %42 = arith.addf %39, %41 : vector<16x128xf32>
    %cst_31 = arith.constant 0.000000e+00 : f32
    %43 = vector.broadcast %cst_31 : f32 to vector<16x128xf32>
    %44 = arith.cmpf ogt, %42, %43 : vector<16x128xf32>
    %cst_32 = arith.constant 0.00999999977 : f32
    %45 = vector.broadcast %cst_32 : f32 to vector<16x128xf32>
    %46 = arith.mulf %45, %42 : vector<16x128xf32>
    %47 = arith.select %44, %42, %46 : vector<16x128xi1>, vector<16x128xf32>
    %48 = arith.truncf %47 : vector<16x128xf32> to vector<16x128xbf16>
    %c0_33 = arith.constant 0 : index
    %c0_34 = arith.constant 0 : index
    %49 = vector.load %arg12[%c0_33, %c0_34] : memref<16x128xbf16, #tpu.memory_space<vmem>>, vector<16x128xbf16>
    tpu.vector_store %arg12[%c0_33, %c0_34], %48 {strides = array<i32>} : memref<16x128xbf16, #tpu.memory_space<vmem>>, vector<16x128xbf16>,
    return
  }
  func.func @transform_0(%arg0: i32) -> (i32, i32) {
    %c0_i32 = arith.constant 0 : i32
    %c0_i32_0 = arith.constant 0 : i32
    return %arg0, %c0_i32 : i32, i32
  }
  func.func @transform_1(%arg0: i32) -> (i32, i32) {
    %c0_i32 = arith.constant 0 : i32
    %c0_i32_0 = arith.constant 0 : i32
    return %arg0, %c0_i32 : i32, i32
  }
  func.func @transform_2(%arg0: i32) -> (i32, i32) {
    %c0_i32 = arith.constant 0 : i32
    %c0_i32_0 = arith.constant 0 : i32
    %c0_i32_1 = arith.constant 0 : i32
    return %c0_i32, %c0_i32_0 : i32, i32
  }
  func.func @transform_3(%arg0: i32) -> (i32, i32) {
    %c0_i32 = arith.constant 0 : i32
    %c0_i32_0 = arith.constant 0 : i32
    %c0_i32_1 = arith.constant 0 : i32
    return %c0_i32, %c0_i32_0 : i32, i32
  }
  func.func @transform_4(%arg0: i32) -> (i32, i32) {
    %c0_i32 = arith.constant 0 : i32
    %c0_i32_0 = arith.constant 0 : i32
    %c0_i32_1 = arith.constant 0 : i32
    return %c0_i32, %c0_i32_0 : i32, i32
  }
  func.func @transform_5(%arg0: i32) -> (i32, i32) {
    %c0_i32 = arith.constant 0 : i32
    %c0_i32_0 = arith.constant 0 : i32
    %c0_i32_1 = arith.constant 0 : i32
    return %c0_i32, %c0_i32_0 : i32, i32
  }
  func.func @transform_6(%arg0: i32) -> (i32, i32) {
    %c0_i32 = arith.constant 0 : i32
    %c0_i32_0 = arith.constant 0 : i32
    %c0_i32_1 = arith.constant 0 : i32
    return %c0_i32, %c0_i32_0 : i32, i32
  }
  func.func @transform_7(%arg0: i32) -> (i32, i32) {
    %c0_i32 = arith.constant 0 : i32
    %c0_i32_0 = arith.constant 0 : i32
    %c0_i32_1 = arith.constant 0 : i32
    return %c0_i32, %c0_i32_0 : i32, i32
  }
  func.func @transform_8(%arg0: i32) -> (i32, i32) {
    %c0_i32 = arith.constant 0 : i32
    %c0_i32_0 = arith.constant 0 : i32
    %c0_i32_1 = arith.constant 0 : i32
    return %c0_i32, %c0_i32_0 : i32, i32
  }
  func.func @transform_9(%arg0: i32) -> (i32, i32) {
    %c0_i32 = arith.constant 0 : i32
    %c0_i32_0 = arith.constant 0 : i32
    %c0_i32_1 = arith.constant 0 : i32
    return %c0_i32, %c0_i32_0 : i32, i32
  }
  func.func @transform_10(%arg0: i32) -> (i32, i32) {
    %c0_i32 = arith.constant 0 : i32
    %c0_i32_0 = arith.constant 0 : i32
    %c0_i32_1 = arith.constant 0 : i32
    return %c0_i32, %c0_i32_0 : i32, i32
  }
  func.func @transform_11(%arg0: i32) -> (i32, i32) {
    %c0_i32 = arith.constant 0 : i32
    %c0_i32_0 = arith.constant 0 : i32
    return %arg0, %c0_i32 : i32, i32
  }
}

module attributes {stable_mosaic.version = 11 : i64} {
  func.func @seq2func_kernel(%arg0: i32, %arg1: memref<16x512xbf16, #tpu.memory_space<vmem>>, %arg2: memref<16x256xbf16, #tpu.memory_space<vmem>>, %arg3: memref<512x64xbf16, #tpu.memory_space<vmem>>, %arg4: memref<1x64xf32, #tpu.memory_space<vmem>>, %arg5: memref<256x64xbf16, #tpu.memory_space<vmem>>, %arg6: memref<1x64xf32, #tpu.memory_space<vmem>>, %arg7: memref<64x128xbf16, #tpu.memory_space<vmem>>, %arg8: memref<64x128xbf16, #tpu.memory_space<vmem>>, %arg9: memref<1x128xf32, #tpu.memory_space<vmem>>, %arg10: memref<128x128xbf16, #tpu.memory_space<vmem>>, %arg11: memref<1x128xf32, #tpu.memory_space<vmem>>, %arg12: memref<16x128xbf16, #tpu.memory_space<vmem>>) attributes {dimension_semantics = [#tpu.dimension_semantics<parallel>], iteration_bounds = array<i64: 2>, scalar_prefetch = 0 : i64, scratch_operands = 0 : i64, tpu.core_type = #tpu.core_type<tc>, window_params = [{transform_indices = @transform_0, window_bounds = array<i64: 16, 512>}, {transform_indices = @transform_1, window_bounds = array<i64: 16, 256>}, {pipeline_mode = #tpu.pipeline_mode<synchronous>, transform_indices = @transform_2, window_bounds = array<i64: 512, 64>}, {pipeline_mode = #tpu.pipeline_mode<synchronous>, transform_indices = @transform_3, window_bounds = array<i64: 1, 64>}, {pipeline_mode = #tpu.pipeline_mode<synchronous>, transform_indices = @transform_4, window_bounds = array<i64: 256, 64>}, {pipeline_mode = #tpu.pipeline_mode<synchronous>, transform_indices = @transform_5, window_bounds = array<i64: 1, 64>}, {pipeline_mode = #tpu.pipeline_mode<synchronous>, transform_indices = @transform_6, window_bounds = array<i64: 64, 128>}, {pipeline_mode = #tpu.pipeline_mode<synchronous>, transform_indices = @transform_7, window_bounds = array<i64: 64, 128>}, {pipeline_mode = #tpu.pipeline_mode<synchronous>, transform_indices = @transform_8, window_bounds = array<i64: 1, 128>}, {pipeline_mode = #tpu.pipeline_mode<synchronous>, transform_indices = @transform_9, window_bounds = array<i64: 128, 128>}, {pipeline_mode = #tpu.pipeline_mode<synchronous>, transform_indices = @transform_10, window_bounds = array<i64: 1, 128>}, {transform_indices = @transform_11, window_bounds = array<i64: 16, 128>}]} {
    %c0 = arith.constant 0 : index
    %c0_0 = arith.constant 0 : index
    %0 = vector.load %arg1[%c0, %c0_0] : memref<16x512xbf16, #tpu.memory_space<vmem>>, vector<16x512xbf16>
    %c0_1 = arith.constant 0 : index
    %c0_2 = arith.constant 0 : index
    %1 = vector.load %arg3[%c0_1, %c0_2] : memref<512x64xbf16, #tpu.memory_space<vmem>>, vector<512x64xbf16>
    %cst = arith.constant dense<0.000000e+00> : vector<16x64xf32>
    %2 = tpu.matmul %0, %1, %cst {dimension_numbers = #tpu.dot_dimension_numbers<[1], [0], [0], [1], [0, 0, 1, 1], [], []>} : vector<16x512xbf16>, vector<512x64xbf16>, vector<16x64xf32> -> vector<16x64xf32>
    %c0_3 = arith.constant 0 : index
    %c0_4 = arith.constant 0 : index
    %3 = vector.load %arg4[%c0_3, %c0_4] : memref<1x64xf32, #tpu.memory_space<vmem>>, vector<1x64xf32>
    %4 = vector.broadcast %3 : vector<1x64xf32> to vector<16x64xf32>
    %5 = arith.addf %2, %4 : vector<16x64xf32>
    %cst_5 = arith.constant 0.000000e+00 : f32
    %6 = vector.broadcast %cst_5 : f32 to vector<16x64xf32>
    %7 = arith.cmpf ogt, %5, %6 : vector<16x64xf32>
    %cst_6 = arith.constant 0.00999999977 : f32
    %8 = vector.broadcast %cst_6 : f32 to vector<16x64xf32>
    %9 = arith.mulf %8, %5 : vector<16x64xf32>
    %10 = arith.select %7, %5, %9 : vector<16x64xi1>, vector<16x64xf32>
    %c0_7 = arith.constant 0 : index
    %c0_8 = arith.constant 0 : index
    %11 = vector.load %arg2[%c0_7, %c0_8] : memref<16x256xbf16, #tpu.memory_space<vmem>>, vector<16x256xbf16>
    %c0_9 = arith.constant 0 : index
    %c0_10 = arith.constant 0 : index
    %12 = vector.load %arg5[%c0_9, %c0_10] : memref<256x64xbf16, #tpu.memory_space<vmem>>, vector<256x64xbf16>
    %cst_11 = arith.constant dense<0.000000e+00> : vector<16x64xf32>
    %13 = tpu.matmul %11, %12, %cst_11 {dimension_numbers = #tpu.dot_dimension_numbers<[1], [0], [0], [1], [0, 0, 1, 1], [], []>} : vector<16x256xbf16>, vector<256x64xbf16>, vector<16x64xf32> -> vector<16x64xf32>
    %c0_12 = arith.constant 0 : index
    %c0_13 = arith.constant 0 : index
    %14 = vector.load %arg6[%c0_12, %c0_13] : memref<1x64xf32, #tpu.memory_space<vmem>>, vector<1x64xf32>
    %15 = vector.broadcast %14 : vector<1x64xf32> to vector<16x64xf32>
    %16 = arith.addf %13, %15 : vector<16x64xf32>
    %cst_14 = arith.constant 0.000000e+00 : f32
    %17 = vector.broadcast %cst_14 : f32 to vector<16x64xf32>
    %18 = arith.cmpf ogt, %16, %17 : vector<16x64xf32>
    %cst_15 = arith.constant 0.00999999977 : f32
    %19 = vector.broadcast %cst_15 : f32 to vector<16x64xf32>
    %20 = arith.mulf %19, %16 : vector<16x64xf32>
    %21 = arith.select %18, %16, %20 : vector<16x64xi1>, vector<16x64xf32>
    %22 = arith.truncf %10 : vector<16x64xf32> to vector<16x64xbf16>
    %c0_16 = arith.constant 0 : index
    %c0_17 = arith.constant 0 : index
    %23 = vector.load %arg7[%c0_16, %c0_17] : memref<64x128xbf16, #tpu.memory_space<vmem>>, vector<64x128xbf16>
    %cst_18 = arith.constant dense<0.000000e+00> : vector<16x128xf32>
    %24 = tpu.matmul %22, %23, %cst_18 {dimension_numbers = #tpu.dot_dimension_numbers<[1], [0], [0], [1], [0, 0, 1, 1], [], []>} : vector<16x64xbf16>, vector<64x128xbf16>, vector<16x128xf32> -> vector<16x128xf32>
    %25 = arith.truncf %21 : vector<16x64xf32> to vector<16x64xbf16>
    %c0_19 = arith.constant 0 : index
    %c0_20 = arith.constant 0 : index
    %26 = vector.load %arg8[%c0_19, %c0_20] : memref<64x128xbf16, #tpu.memory_space<vmem>>, vector<64x128xbf16>
    %cst_21 = arith.constant dense<0.000000e+00> : vector<16x128xf32>
    %27 = tpu.matmul %25, %26, %cst_21 {dimension_numbers = #tpu.dot_dimension_numbers<[1], [0], [0], [1], [0, 0, 1, 1], [], []>} : vector<16x64xbf16>, vector<64x128xbf16>, vector<16x128xf32> -> vector<16x128xf32>
    %28 = arith.addf %24, %27 : vector<16x128xf32>
    %c0_22 = arith.constant 0 : index
    %c0_23 = arith.constant 0 : index
    %29 = vector.load %arg9[%c0_22, %c0_23] : memref<1x128xf32, #tpu.memory_space<vmem>>, vector<1x128xf32>
    %30 = vector.broadcast %29 : vector<1x128xf32> to vector<16x128xf32>
    %31 = arith.addf %28, %30 : vector<16x128xf32>
    %cst_24 = arith.constant 0.000000e+00 : f32
    %32 = vector.broadcast %cst_24 : f32 to vector<16x128xf32>
    %33 = arith.cmpf ogt, %31, %32 : vector<16x128xf32>
    %cst_25 = arith.constant 0.00999999977 : f32
    %34 = vector.broadcast %cst_25 : f32 to vector<16x128xf32>
    %35 = arith.mulf %34, %31 : vector<16x128xf32>
    %36 = arith.select %33, %31, %35 : vector<16x128xi1>, vector<16x128xf32>
    %37 = arith.truncf %36 : vector<16x128xf32> to vector<16x128xbf16>
    %c0_26 = arith.constant 0 : index
    %c0_27 = arith.constant 0 : index
    %38 = vector.load %arg10[%c0_26, %c0_27] : memref<128x128xbf16, #tpu.memory_space<vmem>>, vector<128x128xbf16>
    %cst_28 = arith.constant dense<0.000000e+00> : vector<16x128xf32>
    %39 = tpu.matmul %37, %38, %cst_28 {dimension_numbers = #tpu.dot_dimension_numbers<[1], [0], [0], [1], [0, 0, 1, 1], [], []>} : vector<16x128xbf16>, vector<128x128xbf16>, vector<16x128xf32> -> vector<16x128xf32>
    %c0_29 = arith.constant 0 : index
    %c0_30 = arith.constant 0 : index
    %40 = vector.load %arg11[%c0_29, %c0_30] : memref<1x128xf32, #tpu.memory_space<vmem>>, vector<1x128xf32>
    %41 = vector.broadcast %40 : vector<1x128xf32> to vector<16x128xf32>
    %42 = arith.addf %39, %41 : vector<16x128xf32>
    %cst_31 = arith.constant 0.000000e+00 : f32
    %43 = vector.broadcast %cst_31 : f32 to vector<16x128xf32>
    %44 = arith.cmpf ogt, %42, %43 : vector<16x128xf32>
    %cst_32 = arith.constant 0.00999999977 : f32
    %45 = vector.broadcast %cst_32 : f32 to vector<16x128xf32>
    %46 = arith.mulf %45, %42 : vector<16x128xf32>
    %47 = arith.select %44, %42, %46 : vector<16x128xi1>, vector<16x128xf32>
    %48 = arith.truncf %47 : vector<16x128xf32> to vector<16x128xbf16>
    %c0_33 = arith.constant 0 : index
    %c0_34 = arith.constant 0 : index
    %49 = vector.load %arg12[%c0_33, %c0_34] : memref<16x128xbf16, #tpu.memory_space<vmem>>, vector<16x128xbf16>
    tpu.vector_store %arg12[%c0_33, %c0_34], %48 {strides = array<i32>} : memref<16x128xbf16, #tpu.memory_space<vmem>>, vector<16x128xbf16>,
    return
  }
  func.func @transform_0(%arg0: i32) -> (i32, i32) {
    %c0_i32 = arith.constant 0 : i32
    %c0_i32_0 = arith.constant 0 : i32
    return %arg0, %c0_i32 : i32, i32
  }
  func.func @transform_1(%arg0: i32) -> (i32, i32) {
    %c0_i32 = arith.constant 0 : i32
    %c0_i32_0 = arith.constant 0 : i32
    return %arg0, %c0_i32 : i32, i32
  }
  func.func @transform_2(%arg0: i32) -> (i32, i32) {
    %c0_i32 = arith.constant 0 : i32
    %c0_i32_0 = arith.constant 0 : i32
    %c0_i32_1 = arith.constant 0 : i32
    return %c0_i32, %c0_i32_0 : i32, i32
  }
  func.func @transform_3(%arg0: i32) -> (i32, i32) {
    %c0_i32 = arith.constant 0 : i32
    %c0_i32_0 = arith.constant 0 : i32
    %c0_i32_1 = arith.constant 0 : i32
    return %c0_i32, %c0_i32_0 : i32, i32
  }
  func.func @transform_4(%arg0: i32) -> (i32, i32) {
    %c0_i32 = arith.constant 0 : i32
    %c0_i32_0 = arith.constant 0 : i32
    %c0_i32_1 = arith.constant 0 : i32
    return %c0_i32, %c0_i32_0 : i32, i32
  }
  func.func @transform_5(%arg0: i32) -> (i32, i32) {
    %c0_i32 = arith.constant 0 : i32
    %c0_i32_0 = arith.constant 0 : i32
    %c0_i32_1 = arith.constant 0 : i32
    return %c0_i32, %c0_i32_0 : i32, i32
  }
  func.func @transform_6(%arg0: i32) -> (i32, i32) {
    %c0_i32 = arith.constant 0 : i32
    %c0_i32_0 = arith.constant 0 : i32
    %c0_i32_1 = arith.constant 0 : i32
    return %c0_i32, %c0_i32_0 : i32, i32
  }
  func.func @transform_7(%arg0: i32) -> (i32, i32) {
    %c0_i32 = arith.constant 0 : i32
    %c0_i32_0 = arith.constant 0 : i32
    %c0_i32_1 = arith.constant 0 : i32
    return %c0_i32, %c0_i32_0 : i32, i32
  }
  func.func @transform_8(%arg0: i32) -> (i32, i32) {
    %c0_i32 = arith.constant 0 : i32
    %c0_i32_0 = arith.constant 0 : i32
    %c0_i32_1 = arith.constant 0 : i32
    return %c0_i32, %c0_i32_0 : i32, i32
  }
  func.func @transform_9(%arg0: i32) -> (i32, i32) {
    %c0_i32 = arith.constant 0 : i32
    %c0_i32_0 = arith.constant 0 : i32
    %c0_i32_1 = arith.constant 0 : i32
    return %c0_i32, %c0_i32_0 : i32, i32
  }
  func.func @transform_10(%arg0: i32) -> (i32, i32) {
    %c0_i32 = arith.constant 0 : i32
    %c0_i32_0 = arith.constant 0 : i32
    %c0_i32_1 = arith.constant 0 : i32
    return %c0_i32, %c0_i32_0 : i32, i32
  }
  func.func @transform_11(%arg0: i32) -> (i32, i32) {
    %c0_i32 = arith.constant 0 : i32
    %c0_i32_0 = arith.constant 0 : i32
    return %arg0, %c0_i32 : i32, i32
  }
}

</mosaic_0001>

<bundles_post_ra>
// kernel: tpu_custom_call.1
= control target key start
LH: loop header
LB: loop body
LE: loop exit
PB: predicated region body
PF: predicated region fallthrough
CT: control target
= control target key end

     0   :  { %16 = vsyncpa [#allocation3], 0  ;;  %s2186_s0 = inlined_call_operand.vmem [shape: bf16[32,512], index: 0, kind: input, shape index: {}]   ;;  %s2187_s1 = inlined_call_operand.vmem [shape: bf16[32,256], index: 1, kind: input, shape index: {}]   ;;  %s2188_s2 = inlined_call_operand.vmem [shape: bf16[512,64], index: 2, kind: input, shape index: {}]   ;;  %s2189_s3 = inlined_call_operand.vmem [shape: f32[1,64], index: 3, kind: input, shape index: {}]   ;;  %s2190_s4 = inlined_call_operand.vmem [shape: bf16[256,64], index: 4, kind: input, shape index: {}]   ;;  %s2191_s5 = inlined_call_operand.vmem [shape: f32[1,64], index: 5, kind: input, shape index: {}]   ;;  %s2192_s6 = inlined_call_operand.vmem [shape: bf16[64,128], index: 6, kind: input, shape index: {}]   ;;  %s2193_s7 = inlined_call_operand.vmem [shape: bf16[64,128], index: 7, kind: input, shape index: {}]   ;;  %s2194_s8 = inlined_call_operand.vmem [shape: f32[1,128], index: 8, kind: input, shape index: {}]   ;;  %s2195_s9 = inlined_call_operand.vmem [shape: bf16[128,128], index: 9, kind: input, shape index: {}]   ;;  %s2196_s10 = inlined_call_operand.vmem [shape: f32[1,128], index: 10, kind: input, shape index: {}]   ;;  %s2197_s11 = inlined_call_operand.hbm [shape: bf16[32,128], index: 11, kind: output, shape index: {}]  }
   0x1   :  { %18 = vsyncpa [#allocation3 + $0x1], 0  ;;  %s1851_s17 = smov 0   ;;  %s1853_s18 = smov 0  }
   0x2   :  { %s1855_s19 = smov 0   ;;  %s1857_s20 = smov 0  }
   0x3 LB: > { %2201 = sst [smem:[#allocation5_spill]] %s1780_s19  ;;  %s1872_s21 = sadd.s32 4294967295, %s1784_s20   ;;  %s1784_s20 = sphi %s1857_s20, %s2206_s20   ;;  %s1780_s19 = sphi %s1855_s19, %s2208_s19   ;;  %s1776_s18 = sphi %s1853_s18, %s2210_s18   ;;  %s1772_s17 = sphi %s1851_s17, %s2209_s17  }
   0x4   : > { %s1373_s22 = sadd.s32 4294967294, %s1784_s20   ;;  %s1876_s23 = sadd.s32 1, %s1784_s20  }
   0x5   : > { %2202 = sst [smem:[#allocation6_spill]] %s1876_s23  ;;  %s272_s24 = sadd.s32 1, %s1780_s19 }
   0x6   : > { %s269_s25 = ssub.s32 %s1784_s20, %s1876_s23  ;;  %p282_p0 = scmp.ne.s32.totalorder %s1780_s19, %s1776_s18 }
   0x7   : > { %p270_p1 = scmp.eq.s32.totalorder %s269_s25, 0  ;;  %p283_p2 = scmp.eq.s32.totalorder %s1872_s21, 1 }
   0x8   : > { %p288_p3 = scmp.ne.s32.totalorder %s1776_s18, %s1772_s17  ;;  %p289_p4 = scmp.eq.s32.totalorder %s1373_s22, 1 }
   0x9   : > { %s1887_s26 = scalar_select %p270_p1, %s1780_s19, %s272_s24  }
   0xa   : > { %p1889_p5 = por %p283_p2, %p282_p0  ;;  %p1893_p6 = por %p289_p4, %p288_p3 }
   0xb   : > { %2203 = sst [smem:[#allocation7_spill]] %s1887_s26  ;;  %p1376_p7 = scmp.ge.s32.totalorder %s1784_s20, 1 }
   0xc   : > { %p354_p8 = scmp.lt.s32.totalorder %s1784_s20, 3 }
   0xe   : > { %p355_p9 = pnand %p1376_p7, %p354_p8 }
   0xf   : > { %v1649_v0 = vld [vmem:[%s2188_s2 + $0x40] sm:$0xff] (!%p355_p9)   ;;  %v1653_v4 = vld [vmem:[%s2188_s2 + $0x48] sm:$0xff] (!%p355_p9)   ;;  %v1657_v8 = vld [vmem:[%s2188_s2 + $0x50] sm:$0xff] (!%p355_p9)   ;;  %s1378_s29 = sshll.u32 (!%p355_p9), %s1872_s21, 1  ;;  %v1786_v55 = vmov (!%p355_p9), 0.0   ;;  %vm1787_vm0 = vmmov (!%p355_p9), 0  }
  0x10   : > { %358 = sbr.rel (%p355_p9) target bundleno = 779 (0x30b), region = 64  ;;  %v1650_v1 = vld [vmem:[%s2188_s2] sm:$0xff] (!%p355_p9)   ;;  %1477 = vmatprep.subr.bf16.mxu0 (!%p355_p9), %v1649_v0  ;;  %v1654_v5 = vld [vmem:[%s2188_s2 + $0x8] sm:$0xff] (!%p355_p9)   ;;  %v1658_v9 = vld [vmem:[%s2188_s2 + $0x10] sm:$0xff] (!%p355_p9)   ;;  %p402_p10 = scmp.lt.s32.totalorder (!%p355_p9), %s1378_s29, 3  ;;  %vm1028_vm5 = vcmask (!%p355_p9), 523264  }
  0x11   : > { %v1651_v2 = vld [vmem:[%s2188_s2 + $0xc0] sm:$0xff] (!%p355_p9)   ;;  %1478 = vmatpush3.bf16.msra.mxu0 (!%p355_p9), %v1650_v1  ;;  %v1655_v6 = vld [vmem:[%s2188_s2 + $0xc8] sm:$0xff] (!%p355_p9)   ;;  %v1659_v10 = vld [vmem:[%s2188_s2 + $0xd0] sm:$0xff] (!%p355_p9)   ;;  %s398_s24 = sand.u32 (!%p355_p9), 1, %s1776_s18   ;;  %s1471_s25 = sshll.u32 (!%p355_p9), %s1872_s21, 7 }
  0x12   : > { %v1652_v3 = vld [vmem:[%s2188_s2 + $0x80] sm:$0xff] (!%p355_p9)   ;;  %1499 = vmatprep.subr.bf16.mxu1 (!%p355_p9), %v1651_v2  ;;  %1479 = vmatprep.subr.bf16.mxu0 (!%p355_p9), %v1653_v4  ;;  %v1656_v7 = vld [vmem:[%s2188_s2 + $0x88] sm:$0xff] (!%p355_p9)   ;;  %v1660_v11 = vld [vmem:[%s2188_s2 + $0x90] sm:$0xff] (!%p355_p9)   ;;  %s2141_s14 = scalar_lea.hbm (!%p355_p9), %s2197_s11, %s1471_s25  ;;  %s2145_s26 = scalar_lea.sflag (!%p355_p9), [#allocation3], %s398_s24 }
  0x13   : > { %1500 = vmatpush3.bf16.msra.mxu1 (!%p355_p9), %v1652_v3  ;;  %v1661_v12 = vld [vmem:[%s2188_s2 + $0x58] sm:$0xff] (!%p355_p9)   ;;  %v1665_v16 = vld [vmem:[%s2188_s2 + $0x60] sm:$0xff] (!%p355_p9)   ;;  %v1669_v20 = vld [vmem:[%s2188_s2 + $0x68] sm:$0xff] (!%p355_p9)   ;;  %s1788_s16 = smov (!%p355_p9), [#allocation2]  }
  0x14   : > { %1501 = vmatprep.subr.bf16.mxu1 (!%p355_p9), %v1655_v6  ;;  %v1662_v13 = vld [vmem:[%s2188_s2 + $0x18] sm:$0xff] (!%p355_p9)   ;;  %v1666_v17 = vld [vmem:[%s2188_s2 + $0x20] sm:$0xff] (!%p355_p9)   ;;  %v1670_v21 = vld [vmem:[%s2188_s2 + $0x28] sm:$0xff] (!%p355_p9)  }
  0x15   : > { %1480 = vmatpush3.bf16.msra.mxu0 (!%p355_p9), %v1654_v5  ;;  %v1663_v14 = vld [vmem:[%s2188_s2 + $0xd8] sm:$0xff] (!%p355_p9)   ;;  %v1667_v18 = vld [vmem:[%s2188_s2 + $0xe0] sm:$0xff] (!%p355_p9)   ;;  %v1671_v22 = vld [vmem:[%s2188_s2 + $0xe8] sm:$0xff] (!%p355_p9)  }
  0x16   : > { %1481 = vmatprep.subr.bf16.mxu0 (!%p355_p9), %v1657_v8  ;;  %v1664_v15 = vld [vmem:[%s2188_s2 + $0x98] sm:$0xff] (!%p355_p9)   ;;  %v1668_v19 = vld [vmem:[%s2188_s2 + $0xa0] sm:$0xff] (!%p355_p9)   ;;  %v1672_v23 = vld [vmem:[%s2188_s2 + $0xa8] sm:$0xff] (!%p355_p9)  }
  0x17   : > { %1502 = vmatpush3.bf16.msra.mxu1 %v1656_v7  ;;  %s2212_s29 = smov (!%p402_p10, %s1378_s29), 3  ;;  %v1673_v24 = vld [vmem:[%s2188_s2 + $0x70] sm:$0xff]   ;;  %v1677_v28 = vld [vmem:[%s2188_s2 + $0x78] sm:$0xff]   ;;  %v1684_v34 = vld [vmem:[%s2190_s4 + $0x40] sm:$0xff]  }
  0x18   : > { %1503 = vmatprep.subr.bf16.mxu1 %v1659_v10  ;;  %v1674_v25 = vld [vmem:[%s2188_s2 + $0x30] sm:$0xff]   ;;  %s1467_s15 = sshll.u32 %s2212_s29, 4  ;;  %v1678_v29 = vld [vmem:[%s2188_s2 + $0x38] sm:$0xff]   ;;  %v1688_v37 = vld [vmem:[%s2190_s4] sm:$0xff]   ;;  %s1468_s23 = sshll.u32 %s2212_s29, 3 }
  0x19   : > { %1482 = vmatpush3.bf16.msra.mxu0 %v1658_v9  ;;  %v1675_v26 = vld [vmem:[%s2188_s2 + $0xf0] sm:$0xff]   ;;  %s406_s13 = scalar_lea.vmem %s2186_s0, %s1467_s15  ;;  %v1679_v30 = vld [vmem:[%s2188_s2 + $0xf8] sm:$0xff]   ;;  %v1689_v38 = vld [vmem:[%s2190_s4 + $0x48] sm:$0xff]   ;;  %s413_s22 = scalar_lea.vmem %s2187_s1, %s1468_s23 }
  0x1a   : > { %1483 = vmatprep.subr.bf16.mxu0 %v1661_v12  ;;  %v1676_v27 = vld [vmem:[%s2188_s2 + $0xb0] sm:$0xff]   ;;  %v1683_v33 = vld [vmem:[%s2188_s2 + $0xb8] sm:$0xff]   ;;  %v1690_v39 = vld [vmem:[%s2190_s4 + $0x8] sm:$0xff]   ;;  %s1377_s15 = sshll.u32 %s398_s24, 3 }
  0x1b   : > { %1504 = vmatpush3.bf16.msra.mxu1 %v1660_v11  ;;  %v1680_v31 = vld [vmem:[%s406_s13] ss:$16 sps:$4 sm:$0xff]   ;;  %v1682_v32 = vld [vmem:[%s406_s13 + $0x4] ss:$16 sps:$4 sm:$0xff]   ;;  %v1685_v35 = vld [vmem:[%s406_s13 + $0x8] ss:$16 sps:$4 sm:$0xff]  }
  0x1c   : > { %1505 = vmatprep.subr.bf16.mxu1 %v1663_v14  ;;  %736 = vmatprep.mubr.bf16.mxu0 %v1682_v32  ;;  %v1687_v36 = vld [vmem:[%s406_s13 + $0xc] ss:$16 sps:$4 sm:$0xff]   ;;  %v1691_v40 = vld [vmem:[%s2190_s4 + $0x50] sm:$0xff]   ;;  %v1695_v44 = vld [vmem:[%s2190_s4 + $0x60] sm:$0xff]   ;;  %s1726_s13 = sshll.u32 %s1788_s16, 4  ;;  %s1727_s13 = int_to_ptr.vmem [resolvable:$false] %s1726_s13 }
  0x1d   : > { %1484 = vmatpush3.bf16.msra.mxu0 %v1662_v13  ;;  %777 = vmatprep.mubr.bf16.mxu1 %v1687_v36  ;;  %v1692_v41 = vld [vmem:[%s2190_s4 + $0x10] sm:$0xff]   ;;  %v1693_v42 = vld [vmem:[%s2190_s4 + $0x58] sm:$0xff]   ;;  %v1696_v45 = vld [vmem:[%s2190_s4 + $0x20] sm:$0xff]   ;;  %s1728_s29 = scalar_lea.vmem %s1727_s13, 256 }
  0x1e   : > { %1485 = vmatprep.subr.bf16.mxu0 %v1665_v16  ;;  %v1694_v43 = vld [vmem:[%s2190_s4 + $0x18] sm:$0xff]   ;;  %v1697_v46 = vld [vmem:[%s2190_s4 + $0x68] sm:$0xff]   ;;  %v1699_v49 = vld [vmem:[%s2190_s4 + $0x70] sm:$0xff]  }
  0x1f   : > { %1506 = vmatpush3.bf16.msra.mxu1 %v1664_v15  ;;  %v1705_v47 = vld [vmem:[%s413_s22 + $0x4] ss:$8 sps:$4 sm:$0xff]   ;;  %v1700_v50 = vld [vmem:[%s2190_s4 + $0x30] sm:$0xff]   ;;  %v1701_v51 = vld [vmem:[%s2190_s4 + $0x78] sm:$0xff]  }
  0x20   : > { %1507 = vmatprep.subr.bf16.mxu1 %v1667_v18  ;;  %v1698_v48 = vld [vmem:[%s2190_s4 + $0x28] sm:$0xff]   ;;  %v1702_v52 = vld [vmem:[%s2190_s4 + $0x38] sm:$0xff]   ;;  %v1706_v54 = vld [vmem:[%s2193_s7] sm:$0xff]  }
  0x21   : > { %1486 = vmatpush3.bf16.msra.mxu0 %v1666_v17  ;;  %v1703_v53 = vld [vmem:[%s413_s22] ss:$8 sps:$4 sm:$0xff]   ;;  %v1708_v57 = vld [vmem:[%s2193_s7 + $0x10] sm:$0xff]   ;;  %v1709_v58 = vld [vmem:[%s2193_s7 + $0x18] sm:$0xff]   ;;  %s400_s22 = scalar_lea.vmem [#allocation2], %s1377_s15 }
  0x22   : > { %1487 = vmatprep.subr.bf16.mxu0 %v1669_v20  ;;  %v1707_v56 = vld [vmem:[%s2193_s7 + $0x8] sm:$0xff]   ;;  %v1714_v59 = vld [vmem:[%s2195_s9] sm:$0xff]   ;;  %s1299_s30 = sshll.u32 %s400_s22, 4  ;;  %s2143_s30 = int_to_ptr.vmem [resolvable:$true] %s1299_s30 }
  0x23   : > { %1508 = vmatpush3.bf16.msra.mxu1 %v1668_v19  ;;  %v1384_v61 = vld [vmem:[%s2189_s3] ss:$0 sm:$0xff]  ;;  %v1715_v36 = vld [vmem:[%s2195_s9 + $0x8] sm:$0xff]   ;;  %s1722_s21 = scalar_lea.vmem %s2143_s30, 128  ;;  %p1729_p0 = scmp.lt.s32.totalorder %s2143_s30, %s1727_s13 }
  0x24   : > { %1509 = vmatprep.subr.bf16.mxu1 %v1671_v22  ;;  %v1421_v19 = vld [vmem:[%s2191_s5] ss:$0 sm:$0xff]  ;;  %p1723_p11 = scmp.ne.s32.totalorder %s2143_s30, %s1722_s21  ;;  %p1730_p1 = scmp.lt.s32.totalorder %s1728_s29, %s1722_s21 }
  0x25   : > { %1488 = vmatpush3.bf16.msra.mxu0 %v1670_v21 }
  0x26   : > { %1489 = vmatprep.subr.bf16.mxu0 %v1673_v24  ;;  %p1724_p12 = pnand %p1723_p11, %p1889_p5  ;;  %p1731_p2 = por %p1730_p1, %p1729_p0 }
  0x27   : > { %1510 = vmatpush3.bf16.msra.mxu1 %v1672_v23 }
  0x28   : > { %1511 = vmatprep.subr.bf16.mxu1 %v1675_v26  ;;  %p1725_p13 = pneg %p1724_p12 }
  0x29   : > { %1490 = vmatpush3.bf16.msra.mxu0 %v1674_v25 }
  0x2a   : > { %1491 = vmatprep.subr.bf16.mxu0 %v1677_v28  ;;  %p1732_p3 = pnand %p1731_p2, %p1725_p13 }
  0x2b   : > { %1512 = vmatpush3.bf16.msra.mxu1 %v1676_v27 }
  0x2c   : > { %1513 = vmatprep.subr.bf16.mxu1 %v1679_v30 }
  0x2d   : > { %1492 = vmatpush3.bf16.msra.mxu0 %v1678_v29 }
  0x2e   : > { %1521 = vmatprep.subr.bf16.mxu0 %v1684_v34  ;;  %v1712_v34 = vld [vmem:[%s2192_s6 + $0x10] sm:$0xff]  }
  0x2f   : > { %1514 = vmatpush3.bf16.msra.mxu1 %v1683_v33  ;;  %v1711_v33 = vld [vmem:[%s2192_s6 + $0x8] sm:$0xff]  }
  0x30   : > { %737 = vmatmul.mubr.bf16.vlgmr.msra.gmra.mrb[0].mxu0 %v1680_v31  ;;  %1562 = vmatprep.subr.bf16.mxu1 %v1786_v55  ;;  %v1710_v31 = vld [vmem:[%s2192_s6] sm:$0xff]  }
  0x31   : > { %1522 = vmatpush3.bf16.msra.mxu0 %v1688_v37  ;;  %971 = vmatprep.mubr.bf16.mxu0 %v1705_v47  ;;  %v1716_v37 = vld [vmem:[%s2195_s9 + $0x10] sm:$0xff]  }
  0x32   : > { %778 = vmatmul.mubr.bf16.vlgmr.msra.gmra.mrb[0].mxu1 %v1685_v35  ;;  %1523 = vmatprep.subr.bf16.mxu0 %v1689_v38  ;;  %v1713_v35 = vld [vmem:[%s2192_s6 + $0x18] sm:$0xff]  }
  0x33   : > { %1563 = vmatpush3.bf16.msra.mxu1 %v1706_v54  ;;  %1570 = vmatprep.mubr.msk.bf16.mxu1 %vm1787_vm0, %v1786_v55  ;;  %v1717_v38 = vld [vmem:[%s2195_s9 + $0x18] sm:$0xff]  }
  0x34   : > { %1564 = vmatprep.subr.bf16.mxu1 %v1786_v55 }
  0x35   : > { %1524 = vmatpush3.bf16.msra.mxu0 %v1690_v39  ;;  %v1718_v39 = vld [vmem:[%s2195_s9 + $0x20] sm:$0xff]  }
  0x36   : > { %1525 = vmatprep.subr.bf16.mxu0 %v1691_v40  ;;  %v1719_v40 = vld [vmem:[%s2195_s9 + $0x28] sm:$0xff]  }
  0x37   : > { %1565 = vmatpush3.bf16.msra.mxu1 %v1707_v56 }
  0x38   : > { %1566 = vmatprep.subr.bf16.mxu1 %v1786_v55 }
  0x39   : > { %1526 = vmatpush3.bf16.msra.mxu0 %v1692_v41  ;;  %v1720_v41 = vld [vmem:[%s2195_s9 + $0x30] sm:$0xff]  }
  0x3a   : > { %1527 = vmatprep.subr.bf16.mxu0 %v1693_v42  ;;  %v1721_v42 = vld [vmem:[%s2195_s9 + $0x38] sm:$0xff]  }
  0x3b   : > { %1567 = vmatpush3.bf16.msra.mxu1 %v1708_v57 }
  0x3c   : > { %1568 = vmatprep.subr.bf16.mxu1 %v1786_v55 }
  0x3d   : > { %1528 = vmatpush3.bf16.msra.mxu0 %v1694_v43 }
  0x3e   : > { %1529 = vmatprep.subr.bf16.mxu0 %v1695_v44 }
  0x3f   : > { %1569 = vmatpush3.bf16.msra.mxu1 %v1709_v58 }
  0x40   : > { %1574 = vmatprep.subr.bf16.mxu1 %v1786_v55 }
  0x41   : > { %1530 = vmatpush3.bf16.msra.mxu0 %v1696_v45 }
  0x42   : > { %1531 = vmatprep.subr.bf16.mxu0 %v1697_v46 }
  0x45   : > { %1532 = vmatpush3.bf16.msra.mxu0 %v1698_v48  ;;  %v1450_v48 = vld [vmem:[%s2194_s8] ss:$0 sm:$0xff] }
  0x46   : > { %1533 = vmatprep.subr.bf16.mxu0 %v1699_v49 }
  0x49   : > { %1534 = vmatpush3.bf16.msra.mxu0 %v1700_v50 }
  0x4a   : > { %1535 = vmatprep.subr.bf16.mxu0 %v1701_v51 }
  0x4d   : > { %1536 = vmatpush3.bf16.msra.mxu0 %v1702_v52 }
  0x4e   : > { %1586 = vmatprep.subr.bf16.mxu0 %v1786_v55 }
  0x50   : > { %972 = vmatmul.mubr.bf16.vlgmr.msra.gmra.mrb[4].mxu0 %v1703_v53 }
  0x51   : > { %1602 = vmatprep.mubr.msk.bf16.mxu0 %vm1787_vm0, %v1786_v55  ;;  %1587 = vmatpush3.bf16.msra.mxu0 %v1714_v59 }
  0x52   : > { %1588 = vmatprep.subr.bf16.mxu0 %v1786_v55 }
  0x55   : > { %1589 = vmatpush3.bf16.msra.mxu0 %v1715_v36 }
  0x56   : > { %1590 = vmatprep.subr.bf16.mxu0 %v1786_v55 }
  0x59   : > { %1591 = vmatpush3.bf16.msra.mxu0 %v1716_v37 }
  0x5a   : > { %1592 = vmatprep.subr.bf16.mxu0 %v1786_v55 }
  0x5d   : > { %1593 = vmatpush3.bf16.msra.mxu0 %v1717_v38 }
  0x5e   : > { %1594 = vmatprep.subr.bf16.mxu0 %v1786_v55 }
  0x61   : > { %1595 = vmatpush3.bf16.msra.mxu0 %v1718_v39 }
  0x62   : > { %1596 = vmatprep.subr.bf16.mxu0 %v1786_v55 }
  0x65   : > { %1597 = vmatpush3.bf16.msra.mxu0 %v1719_v40 }
  0x66   : > { %1598 = vmatprep.subr.bf16.mxu0 %v1786_v55 }
  0x69   : > { %1599 = vmatpush3.bf16.msra.mxu0 %v1720_v41 }
  0x6a   : > { %1600 = vmatprep.subr.bf16.mxu0 %v1786_v55 }
  0x6d   : > { %1601 = vmatpush3.bf16.msra.mxu0 %v1721_v42 }
 0x103   : > { %v1493_v60 = vpop.f32.mrb[0].mxu0 }
 0x104   : > { %v1494_v62 = vpop.f32.mrb[1].mxu0 }
 0x105   : > { %v1495_v63 = vadd.f32 %v1494_v62, %v1493_v60  ;;  %v1496_v0 = vpop.f32.mrb[2].mxu0  ;;  %v1515_v1 = vpop.f32.mrb[0].mxu1 }
 0x106   : > { %v1497_v2 = vpop.f32.mrb[3].mxu0  ;;  %v1516_v5 = vpop.f32.mrb[1].mxu1 }
 0x107   : > { %v739_v3 = vadd.f32 %v1495_v63, %v1384_v61  ;;  %v1498_v4 = vadd.f32 %v1497_v2, %v1496_v0  ;;  %v1517_v6 = vadd.f32 %v1516_v5, %v1515_v1  ;;  %v1518_v7 = vpop.f32.mrb[2].mxu1 }
 0x108   : > { %v1519_v9 = vpop.f32.mrb[3].mxu1 }
 0x109   : > { %v742_v8 = vadd.f32 %v1498_v4, %v1384_v61  ;;  %v780_v10 = vadd.f32 %v1517_v6, %v739_v3  ;;  %v1520_v11 = vadd.f32 %v1519_v9, %v1518_v7  ;;  %v1451_v61 = vld [vmem:[%s2196_s10] ss:$0 sm:$0xff] }
 0x10b   : > { %v788_v12 = vmul.f32 0.01, %v780_v10  ;;  %v783_v13 = vadd.f32 %v1520_v11, %v742_v8  ;;  %vm786_vm1 = vcmp.gt.f32.partialorder %v780_v10, 0.0 }
 0x10d   : > { %vm787_vm2 = vcmp.gt.f32.partialorder %v783_v13, 0.0  ;;  %v789_v14 = vmul.f32 0.01, %v783_v13  ;;  %v790_v15 = vsel %vm786_vm1, %v780_v10, %v788_v12 }
 0x10f   : > { %v791_v16 = vsel %vm787_vm2, %v783_v13, %v789_v14 }
 0x110   : > { %v986_v17 = vpack.c.bf16 %v791_v16, %v790_v15 }
 0x123   : > { %v1537_v18 = vpop.f32.mrb[4].mxu0 }
 0x124   : > { %v1538_v20 = vpop.f32.mrb[5].mxu0 }
 0x125   : > { %v1539_v21 = vadd.f32 %v1538_v20, %v1537_v18  ;;  %v1540_v22 = vpop.f32.mrb[6].mxu0 }
 0x126   : > { %v1541_v23 = vpop.f32.mrb[7].mxu0 }
 0x127   : > { %v974_v24 = vadd.f32 %v1539_v21, %v1421_v19  ;;  %v1542_v25 = vadd.f32 %v1541_v23, %v1540_v22 }
 0x129   : > { %v982_v26 = vmul.f32 0.01, %v974_v24  ;;  %v977_v27 = vadd.f32 %v1542_v25, %v1421_v19  ;;  %vm980_vm3 = vcmp.gt.f32.partialorder %v974_v24, 0.0 }
 0x12b   : > { %vm981_vm4 = vcmp.gt.f32.partialorder %v977_v27, 0.0  ;;  %v983_v28 = vmul.f32 0.01, %v977_v27  ;;  %v984_v29 = vsel %vm980_vm3, %v974_v24, %v982_v26 }
 0x12d   : > { %v985_v30 = vsel %vm981_vm4, %v977_v27, %v983_v28 }
 0x12e   : > { %v995_v32 = vpack.c.bf16 %v985_v30, %v984_v29 }
 0x130   : > { %1571 = vmatmul.mubr.msk.bf16.vlgmr.msra.gmra.mrb[4].mxu1 %vm1028_vm5, %v995_v32 }
 0x131   : > { %1575 = vmatpush3.bf16.msra.mxu1 %v1710_v31  ;;  %1582 = vmatprep.mubr.msk.bf16.mxu1 %vm1787_vm0, %v1786_v55 }
 0x132   : > { %1576 = vmatprep.subr.bf16.mxu1 %v1786_v55 }
 0x135   : > { %1577 = vmatpush3.bf16.msra.mxu1 %v1711_v33 }
 0x136   : > { %1578 = vmatprep.subr.bf16.mxu1 %v1786_v55 }
 0x139   : > { %1579 = vmatpush3.bf16.msra.mxu1 %v1712_v34 }
 0x13a   : > { %1580 = vmatprep.subr.bf16.mxu1 %v1786_v55 }
 0x13d   : > { %1581 = vmatpush3.bf16.msra.mxu1 %v1713_v35 }
 0x140   : > { %1583 = vmatmul.mubr.msk.bf16.vlgmr.msra.gmra.mrb[8].mxu1 %vm1028_vm5, %v986_v17 }
 0x203   : > { %v1066_v43 = vpop.f32.mrb[4].mxu1 }
 0x204   : > { %v1572_v44 = vpop.f32.mrb[5].mxu1 }
 0x205   : > { %v1069_v45 = vpop.f32.mrb[6].mxu1 }
 0x206   : > { %v1573_v46 = vpop.f32.mrb[7].mxu1 }
 0x213   : > { %v1134_v47 = vpop.f32.mrb[8].mxu1 }
 0x214   : > { %v1135_v49 = vadd.f32 %v1134_v47, %v1066_v43  ;;  %v1584_v50 = vpop.f32.mrb[9].mxu1 }
 0x215   : > { %v1137_v51 = vpop.f32.mrb[10].mxu1 }
 0x216   : > { %v1148_v52 = vadd.f32 %v1450_v48, %v1135_v49  ;;  %v1138_v53 = vadd.f32 %v1137_v51, %v1069_v45  ;;  %v1585_v54 = vpop.f32.mrb[11].mxu1 }
 0x218   : > { %v1152_v55 = vmul.f32 0.01, %v1148_v52  ;;  %v1149_v56 = vadd.f32 %v1450_v48, %v1138_v53  ;;  %vm1150_vm6 = vcmp.gt.f32.partialorder %v1148_v52, 0.0 }
 0x21a   : > { %vm1151_vm7 = vcmp.gt.f32.partialorder %v1149_v56, 0.0  ;;  %v1153_v57 = vmul.f32 0.01, %v1149_v56  ;;  %v1154_v58 = vsel %vm1150_vm6, %v1148_v52, %v1152_v55 }
 0x21c   : > { %v1155_v59 = vsel %vm1151_vm7, %v1149_v56, %v1153_v57 }
 0x21d   : > { %v1156_v60 = vpack.c.bf16 %v1155_v59, %v1154_v58 }
 0x21f   : > { %1603 = vmatmul.mubr.bf16.vlgmr.msra.gmra.mrb[8].mxu0 %v1156_v60 }
 0x2f2   : > { %v1262_v62 = vpop.f32.mrb[8].mxu0 }
 0x2f3   : > { %v1263_v63 = vadd.f32 %v1451_v61, %v1262_v62  ;;  %v1604_v0 = vpop.f32.mrb[9].mxu0 }
 0x2f4   : > { %v1265_v1 = vpop.f32.mrb[10].mxu0 }
 0x2f5   : > { %v1271_v2 = vmul.f32 0.01, %v1263_v63  ;;  %v1266_v3 = vadd.f32 %v1451_v61, %v1265_v1  ;;  %v1605_v4 = vpop.f32.mrb[11].mxu0  ;;  %vm1269_vm8 = vcmp.gt.f32.partialorder %v1263_v63, 0.0 }
 0x2f7   : > { %vm1270_vm9 = vcmp.gt.f32.partialorder %v1266_v3, 0.0  ;;  %v1272_v5 = vmul.f32 0.01, %v1266_v3  ;;  %v1273_v6 = vsel %vm1269_vm8, %v1263_v63, %v1271_v2 }
 0x2f9   : > { %v1274_v7 = vsel %vm1270_vm9, %v1266_v3, %v1272_v5 }
 0x2fa   : > { %v1475_v8 = vpack.c.bf16 %v1274_v7, %v1273_v6 }
 0x2fc   : > { %1476 = vst [vmem:[%s400_s22] sm:$0xff] %v1475_v8  }
 0x2fd   : > { %1735 = shalt.err (!%p1732_p3)
}
 0x2fe   : > { %s1736_s24 = scalar_lea.hbm %s2141_s14, 128  ;;  %s1740_s25 = scalar_lea.hbm %s2197_s11, 256 }
 0x2ff   : > { %p1737_p4 = scmp.ne.s32.totalorder %s2141_s14, %s1736_s24  ;;  %p1741_p9 = scmp.lt.u32.totalorder %s2141_s14, %s2197_s11 }
 0x300   : > { %p1742_p10 = scmp.lt.u32.totalorder %s1740_s25, %s1736_s24  ;;  %p1744_p12 = scmp.lt.u32.totalorder %s1736_s24, %s2141_s14 }
 0x301   : > { %p1738_p7 = pnand %p1737_p4, %p1889_p5 }
 0x302   : > { %p1743_p11 = por %p1742_p10, %p1741_p9 }
 0x303   : > { %p1739_p8 = pneg %p1738_p7 }
 0x304   : > { %p1745_p13 = por %p1744_p12, %p1743_p11 }
 0x306   : > { %p1746_p0 = pnand %p1745_p13, %p1739_p8 }
 0x308   : > { %1749 = shalt.err (!%p1746_p0)
}
 0x309   : > { %s1789_s23 = smov 64   ;;  %s1790_s21 = smov 4  }
 0x30a   : > { %1606 = dma.vmem_to_hbm [thread:$0]  (%p1889_p5), %s2143_s30, 128, %s2141_s14, %s2145_s26, %s1789_s23, %s1789_s23, %s1790_s21  }
 0x30b PF: > { %p1612_p1 = scmp.ge.s32.totalorder %s1784_s20, 2  ;;  %s1314_s16 = sand.u32 1, %s1772_s17  }
 0x30c   : > { %s1315_s13 = scalar_lea.sflag [#allocation3], %s1314_s16 }
 0x30d   : > { %p1609_p2 = pnand %p1612_p1, %p1893_p6 }
 0x30f   : > { %1767 = dma.done.wait (!%p1609_p2), %s1315_s13, 128  }
 0x310   : > { %1769 = vsyncadd (!%p1609_p2), %s1315_s13, 4294967168  ;;  %s2206_s20 = sld [smem:[#allocation6_spill]]  ;;  %s2207_s29 = sld [smem:[#allocation5_spill]] }
 0x311   : > { %s2208_s19 = sld [smem:[#allocation7_spill]]  ;;  %s2209_s17 = smov %s1776_s18 }
 0x316   : > { %p21_p3 = scmp.ge.s32.totalorder %s2206_s20, 4   ;;  %s2210_s18 = smov %s2207_s29 }
 0x318   :  { %23 = sbr.rel (!%p21_p3) target bundleno = 3 (0x3), region = 102 }
 0x31f   :  { %1320 = vsyncpa [#allocation3], 1 }
 0x320   :  { %1322 = vsyncpa [#allocation3 + $0x1], 1 }

// kernel: tpu_custom_call.1
= control target key start
LH: loop header
LB: loop body
LE: loop exit
PB: predicated region body
PF: predicated region fallthrough
CT: control target
= control target key end

     0   :  { %16 = vsyncpa [#allocation3], 0  ;;  %s2186_s0 = inlined_call_operand.vmem [shape: bf16[32,512], index: 0, kind: input, shape index: {}]   ;;  %s2187_s1 = inlined_call_operand.vmem [shape: bf16[32,256], index: 1, kind: input, shape index: {}]   ;;  %s2188_s2 = inlined_call_operand.vmem [shape: bf16[512,64], index: 2, kind: input, shape index: {}]   ;;  %s2189_s3 = inlined_call_operand.vmem [shape: f32[1,64], index: 3, kind: input, shape index: {}]   ;;  %s2190_s4 = inlined_call_operand.vmem [shape: bf16[256,64], index: 4, kind: input, shape index: {}]   ;;  %s2191_s5 = inlined_call_operand.vmem [shape: f32[1,64], index: 5, kind: input, shape index: {}]   ;;  %s2192_s6 = inlined_call_operand.vmem [shape: bf16[64,128], index: 6, kind: input, shape index: {}]   ;;  %s2193_s7 = inlined_call_operand.vmem [shape: bf16[64,128], index: 7, kind: input, shape index: {}]   ;;  %s2194_s8 = inlined_call_operand.vmem [shape: f32[1,128], index: 8, kind: input, shape index: {}]   ;;  %s2195_s9 = inlined_call_operand.vmem [shape: bf16[128,128], index: 9, kind: input, shape index: {}]   ;;  %s2196_s10 = inlined_call_operand.vmem [shape: f32[1,128], index: 10, kind: input, shape index: {}]   ;;  %s2197_s11 = inlined_call_operand.hbm [shape: bf16[32,128], index: 11, kind: output, shape index: {}]  }
   0x1   :  { %18 = vsyncpa [#allocation3 + $0x1], 0  ;;  %s1851_s17 = smov 0   ;;  %s1853_s18 = smov 0  }
   0x2   :  { %s1855_s19 = smov 0   ;;  %s1857_s20 = smov 0  }
   0x3 LB: > { %2201 = sst [smem:[#allocation5_spill]] %s1780_s19  ;;  %s1872_s21 = sadd.s32 4294967295, %s1784_s20   ;;  %s1784_s20 = sphi %s1857_s20, %s2206_s20   ;;  %s1780_s19 = sphi %s1855_s19, %s2208_s19   ;;  %s1776_s18 = sphi %s1853_s18, %s2210_s18   ;;  %s1772_s17 = sphi %s1851_s17, %s2209_s17  }
   0x4   : > { %s1373_s22 = sadd.s32 4294967294, %s1784_s20   ;;  %s1876_s23 = sadd.s32 1, %s1784_s20  }
   0x5   : > { %2202 = sst [smem:[#allocation6_spill]] %s1876_s23  ;;  %s272_s24 = sadd.s32 1, %s1780_s19 }
   0x6   : > { %s269_s25 = ssub.s32 %s1784_s20, %s1876_s23  ;;  %p282_p0 = scmp.ne.s32.totalorder %s1780_s19, %s1776_s18 }
   0x7   : > { %p270_p1 = scmp.eq.s32.totalorder %s269_s25, 0  ;;  %p283_p2 = scmp.eq.s32.totalorder %s1872_s21, 1 }
   0x8   : > { %p288_p3 = scmp.ne.s32.totalorder %s1776_s18, %s1772_s17  ;;  %p289_p4 = scmp.eq.s32.totalorder %s1373_s22, 1 }
   0x9   : > { %s1887_s26 = scalar_select %p270_p1, %s1780_s19, %s272_s24  }
   0xa   : > { %p1889_p5 = por %p283_p2, %p282_p0  ;;  %p1893_p6 = por %p289_p4, %p288_p3 }
   0xb   : > { %2203 = sst [smem:[#allocation7_spill]] %s1887_s26  ;;  %p1376_p7 = scmp.ge.s32.totalorder %s1784_s20, 1 }
   0xc   : > { %p354_p8 = scmp.lt.s32.totalorder %s1784_s20, 3 }
   0xe   : > { %p355_p9 = pnand %p1376_p7, %p354_p8 }
   0xf   : > { %v1649_v0 = vld [vmem:[%s2188_s2 + $0x40] sm:$0xff] (!%p355_p9)   ;;  %v1653_v4 = vld [vmem:[%s2188_s2 + $0x48] sm:$0xff] (!%p355_p9)   ;;  %v1657_v8 = vld [vmem:[%s2188_s2 + $0x50] sm:$0xff] (!%p355_p9)   ;;  %s1378_s29 = sshll.u32 (!%p355_p9), %s1872_s21, 1  ;;  %v1786_v55 = vmov (!%p355_p9), 0.0   ;;  %vm1787_vm0 = vmmov (!%p355_p9), 0  }
  0x10   : > { %358 = sbr.rel (%p355_p9) target bundleno = 779 (0x30b), region = 64  ;;  %v1650_v1 = vld [vmem:[%s2188_s2] sm:$0xff] (!%p355_p9)   ;;  %1477 = vmatprep.subr.bf16.mxu0 (!%p355_p9), %v1649_v0  ;;  %v1654_v5 = vld [vmem:[%s2188_s2 + $0x8] sm:$0xff] (!%p355_p9)   ;;  %v1658_v9 = vld [vmem:[%s2188_s2 + $0x10] sm:$0xff] (!%p355_p9)   ;;  %p402_p10 = scmp.lt.s32.totalorder (!%p355_p9), %s1378_s29, 3  ;;  %vm1028_vm5 = vcmask (!%p355_p9), 523264  }
  0x11   : > { %v1651_v2 = vld [vmem:[%s2188_s2 + $0xc0] sm:$0xff] (!%p355_p9)   ;;  %1478 = vmatpush3.bf16.msra.mxu0 (!%p355_p9), %v1650_v1  ;;  %v1655_v6 = vld [vmem:[%s2188_s2 + $0xc8] sm:$0xff] (!%p355_p9)   ;;  %v1659_v10 = vld [vmem:[%s2188_s2 + $0xd0] sm:$0xff] (!%p355_p9)   ;;  %s398_s24 = sand.u32 (!%p355_p9), 1, %s1776_s18   ;;  %s1471_s25 = sshll.u32 (!%p355_p9), %s1872_s21, 7 }
  0x12   : > { %v1652_v3 = vld [vmem:[%s2188_s2 + $0x80] sm:$0xff] (!%p355_p9)   ;;  %1499 = vmatprep.subr.bf16.mxu1 (!%p355_p9), %v1651_v2  ;;  %1479 = vmatprep.subr.bf16.mxu0 (!%p355_p9), %v1653_v4  ;;  %v1656_v7 = vld [vmem:[%s2188_s2 + $0x88] sm:$0xff] (!%p355_p9)   ;;  %v1660_v11 = vld [vmem:[%s2188_s2 + $0x90] sm:$0xff] (!%p355_p9)   ;;  %s2141_s14 = scalar_lea.hbm (!%p355_p9), %s2197_s11, %s1471_s25  ;;  %s2145_s26 = scalar_lea.sflag (!%p355_p9), [#allocation3], %s398_s24 }
  0x13   : > { %1500 = vmatpush3.bf16.msra.mxu1 (!%p355_p9), %v1652_v3  ;;  %v1661_v12 = vld [vmem:[%s2188_s2 + $0x58] sm:$0xff] (!%p355_p9)   ;;  %v1665_v16 = vld [vmem:[%s2188_s2 + $0x60] sm:$0xff] (!%p355_p9)   ;;  %v1669_v20 = vld [vmem:[%s2188_s2 + $0x68] sm:$0xff] (!%p355_p9)   ;;  %s1788_s16 = smov (!%p355_p9), [#allocation2]  }
  0x14   : > { %1501 = vmatprep.subr.bf16.mxu1 (!%p355_p9), %v1655_v6  ;;  %v1662_v13 = vld [vmem:[%s2188_s2 + $0x18] sm:$0xff] (!%p355_p9)   ;;  %v1666_v17 = vld [vmem:[%s2188_s2 + $0x20] sm:$0xff] (!%p355_p9)   ;;  %v1670_v21 = vld [vmem:[%s2188_s2 + $0x28] sm:$0xff] (!%p355_p9)  }
  0x15   : > { %1480 = vmatpush3.bf16.msra.mxu0 (!%p355_p9), %v1654_v5  ;;  %v1663_v14 = vld [vmem:[%s2188_s2 + $0xd8] sm:$0xff] (!%p355_p9)   ;;  %v1667_v18 = vld [vmem:[%s2188_s2 + $0xe0] sm:$0xff] (!%p355_p9)   ;;  %v1671_v22 = vld [vmem:[%s2188_s2 + $0xe8] sm:$0xff] (!%p355_p9)  }
  0x16   : > { %1481 = vmatprep.subr.bf16.mxu0 (!%p355_p9), %v1657_v8  ;;  %v1664_v15 = vld [vmem:[%s2188_s2 + $0x98] sm:$0xff] (!%p355_p9)   ;;  %v1668_v19 = vld [vmem:[%s2188_s2 + $0xa0] sm:$0xff] (!%p355_p9)   ;;  %v1672_v23 = vld [vmem:[%s2188_s2 + $0xa8] sm:$0xff] (!%p355_p9)  }
  0x17   : > { %1502 = vmatpush3.bf16.msra.mxu1 %v1656_v7  ;;  %s2212_s29 = smov (!%p402_p10, %s1378_s29), 3  ;;  %v1673_v24 = vld [vmem:[%s2188_s2 + $0x70] sm:$0xff]   ;;  %v1677_v28 = vld [vmem:[%s2188_s2 + $0x78] sm:$0xff]   ;;  %v1684_v34 = vld [vmem:[%s2190_s4 + $0x40] sm:$0xff]  }
  0x18   : > { %1503 = vmatprep.subr.bf16.mxu1 %v1659_v10  ;;  %v1674_v25 = vld [vmem:[%s2188_s2 + $0x30] sm:$0xff]   ;;  %s1467_s15 = sshll.u32 %s2212_s29, 4  ;;  %v1678_v29 = vld [vmem:[%s2188_s2 + $0x38] sm:$0xff]   ;;  %v1688_v37 = vld [vmem:[%s2190_s4] sm:$0xff]   ;;  %s1468_s23 = sshll.u32 %s2212_s29, 3 }
  0x19   : > { %1482 = vmatpush3.bf16.msra.mxu0 %v1658_v9  ;;  %v1675_v26 = vld [vmem:[%s2188_s2 + $0xf0] sm:$0xff]   ;;  %s406_s13 = scalar_lea.vmem %s2186_s0, %s1467_s15  ;;  %v1679_v30 = vld [vmem:[%s2188_s2 + $0xf8] sm:$0xff]   ;;  %v1689_v38 = vld [vmem:[%s2190_s4 + $0x48] sm:$0xff]   ;;  %s413_s22 = scalar_lea.vmem %s2187_s1, %s1468_s23 }
  0x1a   : > { %1483 = vmatprep.subr.bf16.mxu0 %v1661_v12  ;;  %v1676_v27 = vld [vmem:[%s2188_s2 + $0xb0] sm:$0xff]   ;;  %v1683_v33 = vld [vmem:[%s2188_s2 + $0xb8] sm:$0xff]   ;;  %v1690_v39 = vld [vmem:[%s2190_s4 + $0x8] sm:$0xff]   ;;  %s1377_s15 = sshll.u32 %s398_s24, 3 }
  0x1b   : > { %1504 = vmatpush3.bf16.msra.mxu1 %v1660_v11  ;;  %v1680_v31 = vld [vmem:[%s406_s13] ss:$16 sps:$4 sm:$0xff]   ;;  %v1682_v32 = vld [vmem:[%s406_s13 + $0x4] ss:$16 sps:$4 sm:$0xff]   ;;  %v1685_v35 = vld [vmem:[%s406_s13 + $0x8] ss:$16 sps:$4 sm:$0xff]  }
  0x1c   : > { %1505 = vmatprep.subr.bf16.mxu1 %v1663_v14  ;;  %736 = vmatprep.mubr.bf16.mxu0 %v1682_v32  ;;  %v1687_v36 = vld [vmem:[%s406_s13 + $0xc] ss:$16 sps:$4 sm:$0xff]   ;;  %v1691_v40 = vld [vmem:[%s2190_s4 + $0x50] sm:$0xff]   ;;  %v1695_v44 = vld [vmem:[%s2190_s4 + $0x60] sm:$0xff]   ;;  %s1726_s13 = sshll.u32 %s1788_s16, 4  ;;  %s1727_s13 = int_to_ptr.vmem [resolvable:$false] %s1726_s13 }
  0x1d   : > { %1484 = vmatpush3.bf16.msra.mxu0 %v1662_v13  ;;  %777 = vmatprep.mubr.bf16.mxu1 %v1687_v36  ;;  %v1692_v41 = vld [vmem:[%s2190_s4 + $0x10] sm:$0xff]   ;;  %v1693_v42 = vld [vmem:[%s2190_s4 + $0x58] sm:$0xff]   ;;  %v1696_v45 = vld [vmem:[%s2190_s4 + $0x20] sm:$0xff]   ;;  %s1728_s29 = scalar_lea.vmem %s1727_s13, 256 }
  0x1e   : > { %1485 = vmatprep.subr.bf16.mxu0 %v1665_v16  ;;  %v1694_v43 = vld [vmem:[%s2190_s4 + $0x18] sm:$0xff]   ;;  %v1697_v46 = vld [vmem:[%s2190_s4 + $0x68] sm:$0xff]   ;;  %v1699_v49 = vld [vmem:[%s2190_s4 + $0x70] sm:$0xff]  }
  0x1f   : > { %1506 = vmatpush3.bf16.msra.mxu1 %v1664_v15  ;;  %v1705_v47 = vld [vmem:[%s413_s22 + $0x4] ss:$8 sps:$4 sm:$0xff]   ;;  %v1700_v50 = vld [vmem:[%s2190_s4 + $0x30] sm:$0xff]   ;;  %v1701_v51 = vld [vmem:[%s2190_s4 + $0x78] sm:$0xff]  }
  0x20   : > { %1507 = vmatprep.subr.bf16.mxu1 %v1667_v18  ;;  %v1698_v48 = vld [vmem:[%s2190_s4 + $0x28] sm:$0xff]   ;;  %v1702_v52 = vld [vmem:[%s2190_s4 + $0x38] sm:$0xff]   ;;  %v1706_v54 = vld [vmem:[%s2193_s7] sm:$0xff]  }
  0x21   : > { %1486 = vmatpush3.bf16.msra.mxu0 %v1666_v17  ;;  %v1703_v53 = vld [vmem:[%s413_s22] ss:$8 sps:$4 sm:$0xff]   ;;  %v1708_v57 = vld [vmem:[%s2193_s7 + $0x10] sm:$0xff]   ;;  %v1709_v58 = vld [vmem:[%s2193_s7 + $0x18] sm:$0xff]   ;;  %s400_s22 = scalar_lea.vmem [#allocation2], %s1377_s15 }
  0x22   : > { %1487 = vmatprep.subr.bf16.mxu0 %v1669_v20  ;;  %v1707_v56 = vld [vmem:[%s2193_s7 + $0x8] sm:$0xff]   ;;  %v1714_v59 = vld [vmem:[%s2195_s9] sm:$0xff]   ;;  %s1299_s30 = sshll.u32 %s400_s22, 4  ;;  %s2143_s30 = int_to_ptr.vmem [resolvable:$true] %s1299_s30 }
  0x23   : > { %1508 = vmatpush3.bf16.msra.mxu1 %v1668_v19  ;;  %v1384_v61 = vld [vmem:[%s2189_s3] ss:$0 sm:$0xff]  ;;  %v1715_v36 = vld [vmem:[%s2195_s9 + $0x8] sm:$0xff]   ;;  %s1722_s21 = scalar_lea.vmem %s2143_s30, 128  ;;  %p1729_p0 = scmp.lt.s32.totalorder %s2143_s30, %s1727_s13 }
  0x24   : > { %1509 = vmatprep.subr.bf16.mxu1 %v1671_v22  ;;  %v1421_v19 = vld [vmem:[%s2191_s5] ss:$0 sm:$0xff]  ;;  %p1723_p11 = scmp.ne.s32.totalorder %s2143_s30, %s1722_s21  ;;  %p1730_p1 = scmp.lt.s32.totalorder %s1728_s29, %s1722_s21 }
  0x25   : > { %1488 = vmatpush3.bf16.msra.mxu0 %v1670_v21 }
  0x26   : > { %1489 = vmatprep.subr.bf16.mxu0 %v1673_v24  ;;  %p1724_p12 = pnand %p1723_p11, %p1889_p5  ;;  %p1731_p2 = por %p1730_p1, %p1729_p0 }
  0x27   : > { %1510 = vmatpush3.bf16.msra.mxu1 %v1672_v23 }
  0x28   : > { %1511 = vmatprep.subr.bf16.mxu1 %v1675_v26  ;;  %p1725_p13 = pneg %p1724_p12 }
  0x29   : > { %1490 = vmatpush3.bf16.msra.mxu0 %v1674_v25 }
  0x2a   : > { %1491 = vmatprep.subr.bf16.mxu0 %v1677_v28  ;;  %p1732_p3 = pnand %p1731_p2, %p1725_p13 }
  0x2b   : > { %1512 = vmatpush3.bf16.msra.mxu1 %v1676_v27 }
  0x2c   : > { %1513 = vmatprep.subr.bf16.mxu1 %v1679_v30 }
  0x2d   : > { %1492 = vmatpush3.bf16.msra.mxu0 %v1678_v29 }
  0x2e   : > { %1521 = vmatprep.subr.bf16.mxu0 %v1684_v34  ;;  %v1712_v34 = vld [vmem:[%s2192_s6 + $0x10] sm:$0xff]  }
  0x2f   : > { %1514 = vmatpush3.bf16.msra.mxu1 %v1683_v33  ;;  %v1711_v33 = vld [vmem:[%s2192_s6 + $0x8] sm:$0xff]  }
  0x30   : > { %737 = vmatmul.mubr.bf16.vlgmr.msra.gmra.mrb[0].mxu0 %v1680_v31  ;;  %1562 = vmatprep.subr.bf16.mxu1 %v1786_v55  ;;  %v1710_v31 = vld [vmem:[%s2192_s6] sm:$0xff]  }
  0x31   : > { %1522 = vmatpush3.bf16.msra.mxu0 %v1688_v37  ;;  %971 = vmatprep.mubr.bf16.mxu0 %v1705_v47  ;;  %v1716_v37 = vld [vmem:[%s2195_s9 + $0x10] sm:$0xff]  }
  0x32   : > { %778 = vmatmul.mubr.bf16.vlgmr.msra.gmra.mrb[0].mxu1 %v1685_v35  ;;  %1523 = vmatprep.subr.bf16.mxu0 %v1689_v38  ;;  %v1713_v35 = vld [vmem:[%s2192_s6 + $0x18] sm:$0xff]  }
  0x33   : > { %1563 = vmatpush3.bf16.msra.mxu1 %v1706_v54  ;;  %1570 = vmatprep.mubr.msk.bf16.mxu1 %vm1787_vm0, %v1786_v55  ;;  %v1717_v38 = vld [vmem:[%s2195_s9 + $0x18] sm:$0xff]  }
  0x34   : > { %1564 = vmatprep.subr.bf16.mxu1 %v1786_v55 }
  0x35   : > { %1524 = vmatpush3.bf16.msra.mxu0 %v1690_v39  ;;  %v1718_v39 = vld [vmem:[%s2195_s9 + $0x20] sm:$0xff]  }
  0x36   : > { %1525 = vmatprep.subr.bf16.mxu0 %v1691_v40  ;;  %v1719_v40 = vld [vmem:[%s2195_s9 + $0x28] sm:$0xff]  }
  0x37   : > { %1565 = vmatpush3.bf16.msra.mxu1 %v1707_v56 }
  0x38   : > { %1566 = vmatprep.subr.bf16.mxu1 %v1786_v55 }
  0x39   : > { %1526 = vmatpush3.bf16.msra.mxu0 %v1692_v41  ;;  %v1720_v41 = vld [vmem:[%s2195_s9 + $0x30] sm:$0xff]  }
  0x3a   : > { %1527 = vmatprep.subr.bf16.mxu0 %v1693_v42  ;;  %v1721_v42 = vld [vmem:[%s2195_s9 + $0x38] sm:$0xff]  }
  0x3b   : > { %1567 = vmatpush3.bf16.msra.mxu1 %v1708_v57 }
  0x3c   : > { %1568 = vmatprep.subr.bf16.mxu1 %v1786_v55 }
  0x3d   : > { %1528 = vmatpush3.bf16.msra.mxu0 %v1694_v43 }
  0x3e   : > { %1529 = vmatprep.subr.bf16.mxu0 %v1695_v44 }
  0x3f   : > { %1569 = vmatpush3.bf16.msra.mxu1 %v1709_v58 }
  0x40   : > { %1574 = vmatprep.subr.bf16.mxu1 %v1786_v55 }
  0x41   : > { %1530 = vmatpush3.bf16.msra.mxu0 %v1696_v45 }
  0x42   : > { %1531 = vmatprep.subr.bf16.mxu0 %v1697_v46 }
  0x45   : > { %1532 = vmatpush3.bf16.msra.mxu0 %v1698_v48  ;;  %v1450_v48 = vld [vmem:[%s2194_s8] ss:$0 sm:$0xff] }
  0x46   : > { %1533 = vmatprep.subr.bf16.mxu0 %v1699_v49 }
  0x49   : > { %1534 = vmatpush3.bf16.msra.mxu0 %v1700_v50 }
  0x4a   : > { %1535 = vmatprep.subr.bf16.mxu0 %v1701_v51 }
  0x4d   : > { %1536 = vmatpush3.bf16.msra.mxu0 %v1702_v52 }
  0x4e   : > { %1586 = vmatprep.subr.bf16.mxu0 %v1786_v55 }
  0x50   : > { %972 = vmatmul.mubr.bf16.vlgmr.msra.gmra.mrb[4].mxu0 %v1703_v53 }
  0x51   : > { %1602 = vmatprep.mubr.msk.bf16.mxu0 %vm1787_vm0, %v1786_v55  ;;  %1587 = vmatpush3.bf16.msra.mxu0 %v1714_v59 }
  0x52   : > { %1588 = vmatprep.subr.bf16.mxu0 %v1786_v55 }
  0x55   : > { %1589 = vmatpush3.bf16.msra.mxu0 %v1715_v36 }
  0x56   : > { %1590 = vmatprep.subr.bf16.mxu0 %v1786_v55 }
  0x59   : > { %1591 = vmatpush3.bf16.msra.mxu0 %v1716_v37 }
  0x5a   : > { %1592 = vmatprep.subr.bf16.mxu0 %v1786_v55 }
  0x5d   : > { %1593 = vmatpush3.bf16.msra.mxu0 %v1717_v38 }
  0x5e   : > { %1594 = vmatprep.subr.bf16.mxu0 %v1786_v55 }
  0x61   : > { %1595 = vmatpush3.bf16.msra.mxu0 %v1718_v39 }
  0x62   : > { %1596 = vmatprep.subr.bf16.mxu0 %v1786_v55 }
  0x65   : > { %1597 = vmatpush3.bf16.msra.mxu0 %v1719_v40 }
  0x66   : > { %1598 = vmatprep.subr.bf16.mxu0 %v1786_v55 }
  0x69   : > { %1599 = vmatpush3.bf16.msra.mxu0 %v1720_v41 }
  0x6a   : > { %1600 = vmatprep.subr.bf16.mxu0 %v1786_v55 }
  0x6d   : > { %1601 = vmatpush3.bf16.msra.mxu0 %v1721_v42 }
 0x103   : > { %v1493_v60 = vpop.f32.mrb[0].mxu0 }
 0x104   : > { %v1494_v62 = vpop.f32.mrb[1].mxu0 }
 0x105   : > { %v1495_v63 = vadd.f32 %v1494_v62, %v1493_v60  ;;  %v1496_v0 = vpop.f32.mrb[2].mxu0  ;;  %v1515_v1 = vpop.f32.mrb[0].mxu1 }
 0x106   : > { %v1497_v2 = vpop.f32.mrb[3].mxu0  ;;  %v1516_v5 = vpop.f32.mrb[1].mxu1 }
 0x107   : > { %v739_v3 = vadd.f32 %v1495_v63, %v1384_v61  ;;  %v1498_v4 = vadd.f32 %v1497_v2, %v1496_v0  ;;  %v1517_v6 = vadd.f32 %v1516_v5, %v1515_v1  ;;  %v1518_v7 = vpop.f32.mrb[2].mxu1 }
 0x108   : > { %v1519_v9 = vpop.f32.mrb[3].mxu1 }
 0x109   : > { %v742_v8 = vadd.f32 %v1498_v4, %v1384_v61  ;;  %v780_v10 = vadd.f32 %v1517_v6, %v739_v3  ;;  %v1520_v11 = vadd.f32 %v1519_v9, %v1518_v7  ;;  %v1451_v61 = vld [vmem:[%s2196_s10] ss:$0 sm:$0xff] }
 0x10b   : > { %v788_v12 = vmul.f32 0.01, %v780_v10  ;;  %v783_v13 = vadd.f32 %v1520_v11, %v742_v8  ;;  %vm786_vm1 = vcmp.gt.f32.partialorder %v780_v10, 0.0 }
 0x10d   : > { %vm787_vm2 = vcmp.gt.f32.partialorder %v783_v13, 0.0  ;;  %v789_v14 = vmul.f32 0.01, %v783_v13  ;;  %v790_v15 = vsel %vm786_vm1, %v780_v10, %v788_v12 }
 0x10f   : > { %v791_v16 = vsel %vm787_vm2, %v783_v13, %v789_v14 }
 0x110   : > { %v986_v17 = vpack.c.bf16 %v791_v16, %v790_v15 }
 0x123   : > { %v1537_v18 = vpop.f32.mrb[4].mxu0 }
 0x124   : > { %v1538_v20 = vpop.f32.mrb[5].mxu0 }
 0x125   : > { %v1539_v21 = vadd.f32 %v1538_v20, %v1537_v18  ;;  %v1540_v22 = vpop.f32.mrb[6].mxu0 }
 0x126   : > { %v1541_v23 = vpop.f32.mrb[7].mxu0 }
 0x127   : > { %v974_v24 = vadd.f32 %v1539_v21, %v1421_v19  ;;  %v1542_v25 = vadd.f32 %v1541_v23, %v1540_v22 }
 0x129   : > { %v982_v26 = vmul.f32 0.01, %v974_v24  ;;  %v977_v27 = vadd.f32 %v1542_v25, %v1421_v19  ;;  %vm980_vm3 = vcmp.gt.f32.partialorder %v974_v24, 0.0 }
 0x12b   : > { %vm981_vm4 = vcmp.gt.f32.partialorder %v977_v27, 0.0  ;;  %v983_v28 = vmul.f32 0.01, %v977_v27  ;;  %v984_v29 = vsel %vm980_vm3, %v974_v24, %v982_v26 }
 0x12d   : > { %v985_v30 = vsel %vm981_vm4, %v977_v27, %v983_v28 }
 0x12e   : > { %v995_v32 = vpack.c.bf16 %v985_v30, %v984_v29 }
 0x130   : > { %1571 = vmatmul.mubr.msk.bf16.vlgmr.msra.gmra.mrb[4].mxu1 %vm1028_vm5, %v995_v32 }
 0x131   : > { %1575 = vmatpush3.bf16.msra.mxu1 %v1710_v31  ;;  %1582 = vmatprep.mubr.msk.bf16.mxu1 %vm1787_vm0, %v1786_v55 }
 0x132   : > { %1576 = vmatprep.subr.bf16.mxu1 %v1786_v55 }
 0x135   : > { %1577 = vmatpush3.bf16.msra.mxu1 %v1711_v33 }
 0x136   : > { %1578 = vmatprep.subr.bf16.mxu1 %v1786_v55 }
 0x139   : > { %1579 = vmatpush3.bf16.msra.mxu1 %v1712_v34 }
 0x13a   : > { %1580 = vmatprep.subr.bf16.mxu1 %v1786_v55 }
 0x13d   : > { %1581 = vmatpush3.bf16.msra.mxu1 %v1713_v35 }
 0x140   : > { %1583 = vmatmul.mubr.msk.bf16.vlgmr.msra.gmra.mrb[8].mxu1 %vm1028_vm5, %v986_v17 }
 0x203   : > { %v1066_v43 = vpop.f32.mrb[4].mxu1 }
 0x204   : > { %v1572_v44 = vpop.f32.mrb[5].mxu1 }
 0x205   : > { %v1069_v45 = vpop.f32.mrb[6].mxu1 }
 0x206   : > { %v1573_v46 = vpop.f32.mrb[7].mxu1 }
 0x213   : > { %v1134_v47 = vpop.f32.mrb[8].mxu1 }
 0x214   : > { %v1135_v49 = vadd.f32 %v1134_v47, %v1066_v43  ;;  %v1584_v50 = vpop.f32.mrb[9].mxu1 }
 0x215   : > { %v1137_v51 = vpop.f32.mrb[10].mxu1 }
 0x216   : > { %v1148_v52 = vadd.f32 %v1450_v48, %v1135_v49  ;;  %v1138_v53 = vadd.f32 %v1137_v51, %v1069_v45  ;;  %v1585_v54 = vpop.f32.mrb[11].mxu1 }
 0x218   : > { %v1152_v55 = vmul.f32 0.01, %v1148_v52  ;;  %v1149_v56 = vadd.f32 %v1450_v48, %v1138_v53  ;;  %vm1150_vm6 = vcmp.gt.f32.partialorder %v1148_v52, 0.0 }
 0x21a   : > { %vm1151_vm7 = vcmp.gt.f32.partialorder %v1149_v56, 0.0  ;;  %v1153_v57 = vmul.f32 0.01, %v1149_v56  ;;  %v1154_v58 = vsel %vm1150_vm6, %v1148_v52, %v1152_v55 }
 0x21c   : > { %v1155_v59 = vsel %vm1151_vm7, %v1149_v56, %v1153_v57 }
 0x21d   : > { %v1156_v60 = vpack.c.bf16 %v1155_v59, %v1154_v58 }
 0x21f   : > { %1603 = vmatmul.mubr.bf16.vlgmr.msra.gmra.mrb[8].mxu0 %v1156_v60 }
 0x2f2   : > { %v1262_v62 = vpop.f32.mrb[8].mxu0 }
 0x2f3   : > { %v1263_v63 = vadd.f32 %v1451_v61, %v1262_v62  ;;  %v1604_v0 = vpop.f32.mrb[9].mxu0 }
 0x2f4   : > { %v1265_v1 = vpop.f32.mrb[10].mxu0 }
 0x2f5   : > { %v1271_v2 = vmul.f32 0.01, %v1263_v63  ;;  %v1266_v3 = vadd.f32 %v1451_v61, %v1265_v1  ;;  %v1605_v4 = vpop.f32.mrb[11].mxu0  ;;  %vm1269_vm8 = vcmp.gt.f32.partialorder %v1263_v63, 0.0 }
 0x2f7   : > { %vm1270_vm9 = vcmp.gt.f32.partialorder %v1266_v3, 0.0  ;;  %v1272_v5 = vmul.f32 0.01, %v1266_v3  ;;  %v1273_v6 = vsel %vm1269_vm8, %v1263_v63, %v1271_v2 }
 0x2f9   : > { %v1274_v7 = vsel %vm1270_vm9, %v1266_v3, %v1272_v5 }
 0x2fa   : > { %v1475_v8 = vpack.c.bf16 %v1274_v7, %v1273_v6 }
 0x2fc   : > { %1476 = vst [vmem:[%s400_s22] sm:$0xff] %v1475_v8  }
 0x2fd   : > { %1735 = shalt.err (!%p1732_p3)
}
 0x2fe   : > { %s1736_s24 = scalar_lea.hbm %s2141_s14, 128  ;;  %s1740_s25 = scalar_lea.hbm %s2197_s11, 256 }
 0x2ff   : > { %p1737_p4 = scmp.ne.s32.totalorder %s2141_s14, %s1736_s24  ;;  %p1741_p9 = scmp.lt.u32.totalorder %s2141_s14, %s2197_s11 }
 0x300   : > { %p1742_p10 = scmp.lt.u32.totalorder %s1740_s25, %s1736_s24  ;;  %p1744_p12 = scmp.lt.u32.totalorder %s1736_s24, %s2141_s14 }
 0x301   : > { %p1738_p7 = pnand %p1737_p4, %p1889_p5 }
 0x302   : > { %p1743_p11 = por %p1742_p10, %p1741_p9 }
 0x303   : > { %p1739_p8 = pneg %p1738_p7 }
 0x304   : > { %p1745_p13 = por %p1744_p12, %p1743_p11 }
 0x306   : > { %p1746_p0 = pnand %p1745_p13, %p1739_p8 }
 0x308   : > { %1749 = shalt.err (!%p1746_p0)
}
 0x309   : > { %s1789_s23 = smov 64   ;;  %s1790_s21 = smov 4  }
 0x30a   : > { %1606 = dma.vmem_to_hbm [thread:$0]  (%p1889_p5), %s2143_s30, 128, %s2141_s14, %s2145_s26, %s1789_s23, %s1789_s23, %s1790_s21  }
 0x30b PF: > { %p1612_p1 = scmp.ge.s32.totalorder %s1784_s20, 2  ;;  %s1314_s16 = sand.u32 1, %s1772_s17  }
 0x30c   : > { %s1315_s13 = scalar_lea.sflag [#allocation3], %s1314_s16 }
 0x30d   : > { %p1609_p2 = pnand %p1612_p1, %p1893_p6 }
 0x30f   : > { %1767 = dma.done.wait (!%p1609_p2), %s1315_s13, 128  }
 0x310   : > { %1769 = vsyncadd (!%p1609_p2), %s1315_s13, 4294967168  ;;  %s2206_s20 = sld [smem:[#allocation6_spill]]  ;;  %s2207_s29 = sld [smem:[#allocation5_spill]] }
 0x311   : > { %s2208_s19 = sld [smem:[#allocation7_spill]]  ;;  %s2209_s17 = smov %s1776_s18 }
 0x316   : > { %p21_p3 = scmp.ge.s32.totalorder %s2206_s20, 4   ;;  %s2210_s18 = smov %s2207_s29 }
 0x318   :  { %23 = sbr.rel (!%p21_p3) target bundleno = 3 (0x3), region = 102 }
 0x31f   :  { %1320 = vsyncpa [#allocation3], 1 }
 0x320   :  { %1322 = vsyncpa [#allocation3 + $0x1], 1 }

</bundles_post_ra>
